<compile_context>
chip_gen: v6e
topology: v6e:2x2x1
jax: 0.10.0
libtpu: 0.0.40
codegen_flags: <defaults>
</compile_context>

<pallas_src>
import functools
import math

import jax
import jax.numpy as jnp
from jax.experimental import pallas as pl
from jax.experimental.pallas import tpu as pltpu

_LANE = 128


def _round_up(x, m):
    return ((x + m - 1) // m) * m


def _actor_kernel(x_ref,
                  w1_ref, w2_ref, w3_ref, w4_ref,
                  b_ref,
                  out_ref,
                  *, n1, n2, n3, n4):
    # Biases packed in one (1, n1+n2+n3+n4) f32 row; offsets are static multiples of 128.
    b1 = b_ref[:, pl.ds(0, n1)]
    b2 = b_ref[:, pl.ds(n1, n2)]
    b3 = b_ref[:, pl.ds(n1 + n2, n3)]
    b4 = b_ref[:, pl.ds(n1 + n2 + n3, n4)]

    # Layer 1: Linear + ReLU   (bf16 x bf16 -> f32 accumulate on the MXU)
    h = jnp.dot(x_ref[...], w1_ref[...], preferred_element_type=jnp.float32)
    h = jnp.maximum(h + b1, 0.0).astype(jnp.bfloat16)
    # Layer 2: Linear + ReLU
    h = jnp.dot(h, w2_ref[...], preferred_element_type=jnp.float32)
    h = jnp.maximum(h + b2, 0.0).astype(jnp.bfloat16)
    # Layer 3: Linear + ReLU
    h = jnp.dot(h, w3_ref[...], preferred_element_type=jnp.float32)
    h = jnp.maximum(h + b3, 0.0).astype(jnp.bfloat16)
    # Layer 4: Linear + Tanh
    h = jnp.dot(h, w4_ref[...], preferred_element_type=jnp.float32)
    out_ref[...] = jnp.tanh(h + b4).astype(out_ref.dtype)


def actor_forward(state, params, *, batch_block=256):
    """Fused Actor forward pass.

    state:  (B, state_dim) float (cast to bf16 for the DMA / MXU)
    params: dict from init_actor_params (padded bf16 weights, packed f32 biases)
    returns: (B, action_dim) float32 in (-1, 1)

    NOTE: the PyTorch module's forward() does NOT multiply by max_action, so neither do we.
    """
    B, state_dim = state.shape
    action_dim = params["action_dim"]
    n1, n2, n3, n4 = params["padded_dims"]

    x = state.astype(jnp.bfloat16)
    w1, w2, w3, w4 = params["w1"], params["w2"], params["w3"], params["w4"]
    b = params["b_packed"]

    kernel = functools.partial(_actor_kernel, n1=n1, n2=n2, n3=n3, n4=n4)

    if B > batch_block:
        # Tiled path: pad B up to a multiple of the block (padded rows are sliced off),
        # tile the batch axis.  Weights/biases use a constant block index so Pallas
        # DMAs them once and keeps them VMEM-resident across all batch tiles; the
        # "parallel" axis lets a v7x megacore split the batch tiles across both cores.
        bp = _round_up(B, batch_block)
        if bp != B:
            x = jnp.pad(x, ((0, bp - B), (0, 0)))
        grid = (bp // batch_block,)

        x_spec = pl.BlockSpec((batch_block, state_dim), lambda i: (i, 0))

        def const_spec(a):
            return pl.BlockSpec(a.shape, lambda i: (0,) * a.ndim)

        in_specs = [x_spec] + [const_spec(a) for a in (w1, w2, w3, w4, b)]
        out_specs = pl.BlockSpec((batch_block, n4), lambda i: (i, 0))
        out_rows = bp
        dim_sem = ("parallel",)
    else:
        # Small batch: everything (~1.5 MB of bf16 weights) fits VMEM in one shot.
        bp = B

        def full_spec(a):
            return pl.BlockSpec(a.shape, lambda: (0,) * a.ndim)

        in_specs = [full_spec(a) for a in (x, w1, w2, w3, w4, b)]
        out_specs = pl.BlockSpec((B, n4), lambda: (0, 0))
        grid = ()
        out_rows = B
        dim_sem = None

    cp_kwargs = dict(vmem_limit_bytes=16 << 20)
    if dim_sem is not None:
        cp_kwargs["dimension_semantics"] = dim_sem

    out = pl.pallas_call(
        kernel,
        out_shape=jax.ShapeDtypeStruct((out_rows, n4), jnp.float32),
        grid=grid,
        in_specs=in_specs,
        out_specs=out_specs,
        compiler_params=pltpu.CompilerParams(**cp_kwargs),
    )(x, w1, w2, w3, w4, b)

    return out[:B, :action_dim]


def init_actor_params(key, state_dim, action_dim):
    """Deterministic init mirroring PyTorch nn.Linear default:
    U(-1/sqrt(fan_in), 1/sqrt(fan_in)) for both weight and bias.

    Layer widths are zero-padded to lane multiples of 128 (800->896, 500->512,
    300->384, action_dim->128).  Weights stored as bf16; the four biases are
    packed (zero-padded) into a single (1, n1+n2+n3+n4) f32 row.
    """
    logical = [(state_dim, 800), (800, 500), (500, 300), (300, action_dim)]
    n_pad = [_round_up(n, _LANE) for _, n in logical]          # 896, 512, 384, 128
    k_pad = [state_dim] + n_pad[:-1]                            # padded fan-ins

    params = {"action_dim": action_dim, "padded_dims": tuple(n_pad)}
    biases = []
    for i, ((fan_in, fan_out), kp, np_) in enumerate(zip(logical, k_pad, n_pad), start=1):
        key, kw, kb = jax.random.split(key, 3)
        bound = 1.0 / math.sqrt(fan_in)
        w = jax.random.uniform(kw, (fan_in, fan_out), jnp.float32, -bound, bound)
        bvec = jax.random.uniform(kb, (fan_out,), jnp.float32, -bound, bound)
        w_p = jnp.zeros((kp, np_), jnp.float32).at[:fan_in, :fan_out].set(w)
        b_p = jnp.zeros((np_,), jnp.float32).at[:fan_out].set(bvec)
        params[f"w{i}"] = w_p.astype(jnp.bfloat16)
        biases.append(b_p)
    params["b_packed"] = jnp.concatenate(biases)[None, :]       # (1, 1920) f32
    return params


def actor_reference(state, params):
    """Plain-JAX reference mirroring the kernel numerics (bf16 operands, f32 acc)."""
    n1, n2, n3, n4 = params["padded_dims"]
    offs = [0, n1, n1 + n2, n1 + n2 + n3, n1 + n2 + n3 + n4]
    b = params["b_packed"]
    h = state.astype(jnp.bfloat16)
    for i in range(1, 5):
        bi = b[:, offs[i - 1]:offs[i]]
        h = jnp.dot(h, params[f"w{i}"], preferred_element_type=jnp.float32)
        if i < 4:
            h = jnp.maximum(h + bi, 0.0).astype(jnp.bfloat16)
        else:
            h = jnp.tanh(h + bi)
    return h[:, :params["action_dim"]]


if __name__ == "__main__":
    # Small shapes consistent with the module: batch=8, state_dim=32, action_dim=4.
    batch, state_dim, action_dim = 8, 32, 4

    key = jax.random.PRNGKey(0)
    key, ks = jax.random.split(key)
    state = jax.random.normal(ks, (batch, state_dim), jnp.float32)
    params = init_actor_params(key, state_dim, action_dim)

    # Single-block path (small batch).
    out = jax.block_until_ready(actor_forward(state, params))
    ref = actor_reference(state, params)
    assert out.shape == (batch, action_dim)
    assert bool(jnp.all(jnp.abs(out) < 1.0)), "tanh range violated"
    assert jnp.allclose(out, ref, atol=2e-2, rtol=2e-2), "mismatch vs reference (B=8)"

    # Batch-tiled path with a ragged batch (exercises pad-to-block + parallel grid;
    # weights/biases stay VMEM-resident across tiles via constant block indices).
    big_batch = 600
    key, kb = jax.random.split(key)
    state_big = jax.random.normal(kb, (big_batch, state_dim), jnp.float32)
    out_big = jax.block_until_ready(actor_forward(state_big, params))
    ref_big = actor_reference(state_big, params)
    assert out_big.shape == (big_batch, action_dim)
    assert jnp.allclose(out_big, ref_big, atol=2e-2, rtol=2e-2), "mismatch vs reference (B=600)"

    print("KERNEL_OK")
</pallas_src>

<mosaic_0001>
module attributes {stable_mosaic.version = 11 : i64} {
  func.func @_actor_kernel(%arg0: memref<8x32xbf16, #tpu.memory_space<vmem>>, %arg1: memref<32x896xbf16, #tpu.memory_space<vmem>>, %arg2: memref<896x512xbf16, #tpu.memory_space<vmem>>, %arg3: memref<512x384xbf16, #tpu.memory_space<vmem>>, %arg4: memref<384x128xbf16, #tpu.memory_space<vmem>>, %arg5: memref<1x1920xf32, #tpu.memory_space<vmem>>, %arg6: memref<8x128xf32, #tpu.memory_space<vmem>>) attributes {dimension_semantics = [], scalar_prefetch = 0 : i64, scratch_operands = 0 : i64, tpu.core_type = #tpu.core_type<tc>} {
    %c0 = arith.constant 0 : index
    %c0_0 = arith.constant 0 : index
    %0 = vector.load %arg5[%c0, %c0_0] : memref<1x1920xf32, #tpu.memory_space<vmem>>, vector<1x896xf32>
    %c0_1 = arith.constant 0 : index
    %c896 = arith.constant 896 : index
    %1 = vector.load %arg5[%c0_1, %c896] : memref<1x1920xf32, #tpu.memory_space<vmem>>, vector<1x512xf32>
    %c0_2 = arith.constant 0 : index
    %c1408 = arith.constant 1408 : index
    %2 = vector.load %arg5[%c0_2, %c1408] : memref<1x1920xf32, #tpu.memory_space<vmem>>, vector<1x384xf32>
    %c0_3 = arith.constant 0 : index
    %c1792 = arith.constant 1792 : index
    %3 = vector.load %arg5[%c0_3, %c1792] : memref<1x1920xf32, #tpu.memory_space<vmem>>, vector<1x128xf32>
    %c0_4 = arith.constant 0 : index
    %c0_5 = arith.constant 0 : index
    %4 = vector.load %arg0[%c0_4, %c0_5] : memref<8x32xbf16, #tpu.memory_space<vmem>>, vector<8x32xbf16>
    %c0_6 = arith.constant 0 : index
    %c0_7 = arith.constant 0 : index
    %5 = vector.load %arg1[%c0_6, %c0_7] : memref<32x896xbf16, #tpu.memory_space<vmem>>, vector<32x896xbf16>
    %cst = arith.constant dense<0.000000e+00> : vector<8x896xf32>
    %6 = tpu.matmul %4, %5, %cst {dimension_numbers = #tpu.dot_dimension_numbers<[1], [0], [0], [1], [0, 0, 1, 1], [], []>} : vector<8x32xbf16>, vector<32x896xbf16>, vector<8x896xf32> -> vector<8x896xf32>
    %7 = vector.broadcast %0 : vector<1x896xf32> to vector<8x896xf32>
    %8 = arith.addf %6, %7 : vector<8x896xf32>
    %cst_8 = arith.constant 0.000000e+00 : f32
    %9 = vector.broadcast %cst_8 : f32 to vector<8x896xf32>
    %10 = arith.maximumf %8, %9 : vector<8x896xf32>
    %11 = arith.truncf %10 : vector<8x896xf32> to vector<8x896xbf16>
    %c0_9 = arith.constant 0 : index
    %c0_10 = arith.constant 0 : index
    %12 = vector.load %arg2[%c0_9, %c0_10] : memref<896x512xbf16, #tpu.memory_space<vmem>>, vector<896x512xbf16>
    %cst_11 = arith.constant dense<0.000000e+00> : vector<8x512xf32>
    %13 = tpu.matmul %11, %12, %cst_11 {dimension_numbers = #tpu.dot_dimension_numbers<[1], [0], [0], [1], [0, 0, 1, 1], [], []>} : vector<8x896xbf16>, vector<896x512xbf16>, vector<8x512xf32> -> vector<8x512xf32>
    %14 = vector.broadcast %1 : vector<1x512xf32> to vector<8x512xf32>
    %15 = arith.addf %13, %14 : vector<8x512xf32>
    %cst_12 = arith.constant 0.000000e+00 : f32
    %16 = vector.broadcast %cst_12 : f32 to vector<8x512xf32>
    %17 = arith.maximumf %15, %16 : vector<8x512xf32>
    %18 = arith.truncf %17 : vector<8x512xf32> to vector<8x512xbf16>
    %c0_13 = arith.constant 0 : index
    %c0_14 = arith.constant 0 : index
    %19 = vector.load %arg3[%c0_13, %c0_14] : memref<512x384xbf16, #tpu.memory_space<vmem>>, vector<512x384xbf16>
    %cst_15 = arith.constant dense<0.000000e+00> : vector<8x384xf32>
    %20 = tpu.matmul %18, %19, %cst_15 {dimension_numbers = #tpu.dot_dimension_numbers<[1], [0], [0], [1], [0, 0, 1, 1], [], []>} : vector<8x512xbf16>, vector<512x384xbf16>, vector<8x384xf32> -> vector<8x384xf32>
    %21 = vector.broadcast %2 : vector<1x384xf32> to vector<8x384xf32>
    %22 = arith.addf %20, %21 : vector<8x384xf32>
    %cst_16 = arith.constant 0.000000e+00 : f32
    %23 = vector.broadcast %cst_16 : f32 to vector<8x384xf32>
    %24 = arith.maximumf %22, %23 : vector<8x384xf32>
    %25 = arith.truncf %24 : vector<8x384xf32> to vector<8x384xbf16>
    %c0_17 = arith.constant 0 : index
    %c0_18 = arith.constant 0 : index
    %26 = vector.load %arg4[%c0_17, %c0_18] : memref<384x128xbf16, #tpu.memory_space<vmem>>, vector<384x128xbf16>
    %cst_19 = arith.constant dense<0.000000e+00> : vector<8x128xf32>
    %27 = tpu.matmul %25, %26, %cst_19 {dimension_numbers = #tpu.dot_dimension_numbers<[1], [0], [0], [1], [0, 0, 1, 1], [], []>} : vector<8x384xbf16>, vector<384x128xbf16>, vector<8x128xf32> -> vector<8x128xf32>
    %28 = vector.broadcast %3 : vector<1x128xf32> to vector<8x128xf32>
    %29 = arith.addf %27, %28 : vector<8x128xf32>
    %30 = math.tanh %29 : vector<8x128xf32>
    %c0_20 = arith.constant 0 : index
    %c0_21 = arith.constant 0 : index
    %31 = vector.load %arg6[%c0_20, %c0_21] : memref<8x128xf32, #tpu.memory_space<vmem>>, vector<8x128xf32>
    tpu.vector_store %arg6[%c0_20, %c0_21], %30 {strides = array<i32>} : memref<8x128xf32, #tpu.memory_space<vmem>>, vector<8x128xf32>,
    return
  }
}

</mosaic_0001>

<bundles_post_ra>
// kernel: tpu_custom_call.1
= control target key start
LH: loop header
LB: loop body
LE: loop exit
PB: predicated region body
PF: predicated region fallthrough
CT: control target
= control target key end

     0   :  { %11 = vsyncpa [#allocation3], 0  ;;  %s4566_s0 = inlined_call_operand.hbm [shape: bf16[8,32], index: 0, kind: input, shape index: {}]   ;;  %s4567_s1 = inlined_call_operand.hbm [shape: bf16[32,896], index: 1, kind: input, shape index: {}]   ;;  %s4568_s2 = inlined_call_operand.hbm [shape: bf16[896,512], index: 2, kind: input, shape index: {}]   ;;  %s4569_s3 = inlined_call_operand.hbm [shape: bf16[512,384], index: 3, kind: input, shape index: {}]   ;;  %s4570_s4 = inlined_call_operand.hbm [shape: bf16[384,128], index: 4, kind: input, shape index: {}]   ;;  %s4571_s5 = inlined_call_operand.hbm [shape: f32[1,1920], index: 5, kind: input, shape index: {}]   ;;  %s4572_s6 = inlined_call_operand.hbm [shape: f32[8,128], index: 6, kind: output, shape index: {}]  }
   0x1   :  { %12 = vsyncpa [#allocation6], 0 }
   0x2   :  { %13 = vsyncpa [#allocation9], 0 }
   0x3   :  { %14 = vsyncpa [#allocation12], 0 }
   0x4   :  { %15 = vsyncpa [#allocation4], 0  ;;  %s4383_s21 = smov [#allocation5]  }
   0x5   :  { %s31_s22 = sshll.u32 %s4383_s21, 4  ;;  %s32_s22 = int_to_ptr.vmem [resolvable:$true] %s31_s22 }
   0x6   :  { %s4241_s23 = scalar_lea.vmem %s32_s22, 1792  ;;  %p4246_p1 = scmp.lt.s32.totalorder %s32_s22, %s32_s22 }
   0x7   :  { %p4242_p0 = scmp.ne.s32.totalorder %s32_s22, %s4241_s23  ;;  %p4247_p2 = scmp.lt.s32.totalorder %s4241_s23, %s4241_s23 }
   0x9   :  { %p4248_p3 = por %p4247_p2, %p4246_p1 }
   0xb   :  { %p4249_p4 = pnand %p4248_p3, %p4242_p0 }
   0xd   :  { %4252 = shalt.err (!%p4249_p4)
}
   0xe   :  { %s4384_s24 = smov 448   ;;  %s4385_s25 = smov 28  }
   0xf   :  { %37 = dma.hbm_to_vmem [thread:$0]  %s4567_s1, 1792, %s32_s22, [#allocation6], %s4384_s24, %s4384_s24, %s4385_s25  }
  0x10   :  { %s4386_s28 = smov [#allocation8]  }
  0x11   :  { %s55_s29 = sshll.u32 %s4386_s28, 4  ;;  %s56_s29 = int_to_ptr.vmem [resolvable:$true] %s55_s29 }
  0x12   :  { %s4261_s30 = scalar_lea.vmem %s56_s29, 12288  ;;  %p4266_p6 = scmp.lt.s32.totalorder %s56_s29, %s56_s29 }
  0x13   :  { %p4262_p5 = scmp.ne.s32.totalorder %s56_s29, %s4261_s30  ;;  %p4267_p7 = scmp.lt.s32.totalorder %s4261_s30, %s4261_s30 }
  0x15   :  { %p4268_p8 = por %p4267_p7, %p4266_p6 }
  0x17   :  { %p4269_p9 = pnand %p4268_p8, %p4262_p5 }
  0x19   :  { %4272 = shalt.err (!%p4269_p9)
}
  0x1a   :  { %s4387_s7 = smov 192   ;;  %s4388_s8 = smov 12  }
  0x1b   :  { %61 = dma.hbm_to_vmem [thread:$0]  %s4569_s3, 12288, %s56_s29, [#allocation9], %s4387_s7, %s4387_s7, %s4388_s8  }
  0x1c   :  { %s4389_s11 = smov [#allocation2]   ;;  %s4390_s13 = smov [#allocation7]  }
  0x1d   :  { %s22_s12 = sshll.u32 %s4389_s11, 4  ;;  %s43_s1 = sshll.u32 %s4390_s13, 4  ;;  %s23_s12 = int_to_ptr.vmem [resolvable:$true] %s22_s12  ;;  %s44_s1 = int_to_ptr.vmem [resolvable:$true] %s43_s1 }
  0x1e   :  { %s4281_s14 = scalar_lea.vmem %s23_s12, 64  ;;  %p4286_p11 = scmp.lt.s32.totalorder %s23_s12, %s23_s12 }
  0x1f   :  { %p4282_p10 = scmp.ne.s32.totalorder %s23_s12, %s4281_s14  ;;  %p4287_p12 = scmp.lt.s32.totalorder %s4281_s14, %s4281_s14 }
  0x21   :  { %p4288_p13 = por %p4287_p12, %p4286_p11 }
  0x23   :  { %p4289_p0 = pnand %p4288_p13, %p4282_p10 }
  0x25   :  { %4292 = shalt.err (!%p4289_p0)
}
  0x26   :  { %25 = dma.hbm_to_vmem [thread:$0]  %s4566_s0, 64, %s23_s12, [#allocation3]  }
  0x27   :  { %s4301_s17 = scalar_lea.vmem %s44_s1, 28672  ;;  %p4306_p2 = scmp.lt.s32.totalorder %s44_s1, %s44_s1 }
  0x28   :  { %p4302_p1 = scmp.ne.s32.totalorder %s44_s1, %s4301_s17  ;;  %p4307_p3 = scmp.lt.s32.totalorder %s4301_s17, %s4301_s17 }
  0x2a   :  { %p4308_p4 = por %p4307_p3, %p4306_p2 }
  0x2c   :  { %p4309_p5 = pnand %p4308_p4, %p4302_p1 }
  0x2e   :  { %4312 = shalt.err (!%p4309_p5)
}
  0x2f   :  { %s4391_s3 = smov 256   ;;  %s4392_s18 = smov 16  }
  0x30   :  { %49 = dma.hbm_to_vmem [thread:$0]  %s4568_s2, 28672, %s44_s1, [#allocation6], %s4391_s3, %s4391_s3, %s4392_s18  }
  0x31   :  { %s4393_s21 = smov [#allocation10]  }
  0x32   :  { %s67_s22 = sshll.u32 %s4393_s21, 4  ;;  %s68_s22 = int_to_ptr.vmem [resolvable:$true] %s67_s22 }
  0x33   :  { %s4321_s23 = scalar_lea.vmem %s68_s22, 3072  ;;  %p4326_p7 = scmp.lt.s32.totalorder %s68_s22, %s68_s22 }
  0x34   :  { %p4322_p6 = scmp.ne.s32.totalorder %s68_s22, %s4321_s23  ;;  %p4327_p8 = scmp.lt.s32.totalorder %s4321_s23, %s4321_s23 }
  0x36   :  { %p4328_p9 = por %p4327_p8, %p4326_p7 }
  0x38   :  { %p4329_p10 = pnand %p4328_p9, %p4322_p6 }
  0x3a   :  { %4332 = shalt.err (!%p4329_p10)
}
  0x3b   :  { %s4394_s0 = smov 64   ;;  %s4395_s24 = smov 4  }
  0x3c   :  { %73 = dma.hbm_to_vmem [thread:$0]  %s4570_s4, 3072, %s68_s22, [#allocation9], %s4394_s0, %s4394_s0, %s4395_s24  }
  0x3d   :  { %s4396_s27 = smov [#allocation11]  }
  0x3e   :  { %s80_s28 = sshll.u32 %s4396_s27, 4  ;;  %s81_s28 = int_to_ptr.vmem [resolvable:$true] %s80_s28 }
  0x3f   :  { %s4341_s2 = scalar_lea.vmem %s81_s28, 240  ;;  %s4345_s29 = scalar_lea.vmem %s81_s28, 256 }
  0x40   :  { %p4342_p11 = scmp.ne.s32.totalorder %s81_s28, %s4341_s2  ;;  %p4346_p12 = scmp.lt.s32.totalorder %s81_s28, %s81_s28 }
  0x41   :  { %p4347_p13 = scmp.lt.s32.totalorder %s4345_s29, %s4341_s2 }
  0x43   :  { %p4348_p0 = por %p4347_p13, %p4346_p12 }
  0x45   :  { %p4349_p1 = pnand %p4348_p0, %p4342_p11 }
  0x47   :  { %4352 = shalt.err (!%p4349_p1)
}
  0x48   :  { %83 = dma.hbm_to_vmem [thread:$0]  %s4571_s5, 240, %s81_s28, [#allocation12]  }
  0x49   :  { %4373 = dma.done.wait [#allocation3], 64  }
  0x4a   :  { %4374 = vsyncadd [#allocation3], 4294967232 }
  0x4b   :  { %4375 = dma.done.wait [#allocation6], 30464  }
  0x4c   :  { %4376 = vsyncadd [#allocation6], 4294936832 }
  0x4d   :  { %4377 = dma.done.wait [#allocation9], 15360  }
  0x4e   :  { %4378 = vsyncadd [#allocation9], 4294951936 }
  0x4f   :  { %4379 = dma.done.wait [#allocation12], 240  }
  0x50   :  { %4380 = vsyncadd [#allocation12], 4294967056  ;;  %v4397_v0 = vmov 0   ;;  %v3723_v1 = vld [vmem:[#allocation5 + $0x3c] ss:$28 sps:$4 sm:$0xff]   ;;  %vm232_vm0 = vcmask 261120  }
  0x51   :  { %268 = vmatprep.mubr.bf16.mxu0 %v4397_v0  ;;  %309 = vmatprep.mubr.bf16.mxu1 %v4397_v0  ;;  %v3725_v2 = vld [vmem:[#allocation5 + $0x44] ss:$28 sps:$4 sm:$0xff]   ;;  %v3727_v3 = vld [vmem:[#allocation5 + $0x38] ss:$28 sps:$4 sm:$0xff]   ;;  %v3731_v6 = vld [vmem:[#allocation5 + $0xc] ss:$28 sps:$4 sm:$0xff]  }
  0x52   :  { %248 = vmatprep.subr.bf16.mxu0 %v3723_v1  ;;  %v3728_v4 = vld [vmem:[#allocation5 + $0x40] ss:$28 sps:$4 sm:$0xff]   ;;  %289 = vmatprep.subr.bf16.mxu1 %v3725_v2  ;;  %v3734_v8 = vld [vmem:[#allocation5 + $0x8] ss:$28 sps:$4 sm:$0xff]   ;;  %v3735_v10 = vld [vmem:[#allocation5 + $0x50] ss:$28 sps:$4 sm:$0xff]  }
  0x53   :  { %v3729_v5 = vld [vmem:[#allocation5 + $0x4] ss:$28 sps:$4 sm:$0xff]   ;;  %249 = vmatpush1.bf16.msra.mxu0 %v3727_v3  ;;  %290 = vmatpush1.bf16.msra.mxu1 %v3728_v4  ;;  %v107_v9 = vld [vmem:[#allocation2] sm:$0xf]  ;;  %v3739_v11 = vld [vmem:[#allocation5 + $0x4c] ss:$28 sps:$4 sm:$0xff]  }
  0x54   :  { %v3733_v7 = vld [vmem:[#allocation5] ss:$28 sps:$4 sm:$0xff]   ;;  %250 = vmatprep.subr.bf16.mxu0 %v3729_v5  ;;  %291 = vmatprep.subr.bf16.mxu1 %v3731_v6  ;;  %v4398_v12 = vmov 0.0   ;;  %v3737_v13 = vld [vmem:[#allocation5 + $0x48] ss:$28 sps:$4 sm:$0xff]   ;;  %vm4399_vm1 = vmmov 0  }
  0x55   :  { %v3742_v14 = vld [vmem:[#allocation5 + $0x14] ss:$28 sps:$4 sm:$0xff]   ;;  %s4400_s4 = smov [#allocation13]  }
  0x56   :  { %v3736_v15 = vld [vmem:[#allocation5 + $0x18] ss:$28 sps:$4 sm:$0xff]   ;;  %v3740_v16 = vld [vmem:[#allocation5 + $0x10] ss:$28 sps:$4 sm:$0xff]   ;;  %s3224_s5 = sshll.u32 %s4400_s4, 4  ;;  %s3225_s5 = int_to_ptr.vmem [resolvable:$true] %s3224_s5 }
  0x57   :  { %251 = vmatpush1.bf16.msra.mxu0 %v3733_v7  ;;  %292 = vmatpush1.bf16.msra.mxu1 %v3734_v8  ;;  %v3748_v17 = vld [vmem:[#allocation7 + $0x2e4] ss:$16 sps:$4 sm:$0xff]   ;;  %v3743_v19 = vld [vmem:[#allocation7 + $0xe0] ss:$16 sps:$4 sm:$0xff]   ;;  %s4353_s8 = scalar_lea.vmem %s3225_s5, 128  ;;  %p4358_p3 = scmp.lt.s32.totalorder %s3225_s5, %s3225_s5 }
  0x58   :  { %3677 = vmatprep.subr.bf16.mxu1 %v4398_v12  ;;  %330 = vmatprep.subr.bf16.mxu0 %v3739_v11  ;;  %v3745_v18 = vld [vmem:[#allocation7 + $0xe4] ss:$16 sps:$4 sm:$0xff]   ;;  %v3746_v20 = vld [vmem:[#allocation7 + $0x2e0] ss:$16 sps:$4 sm:$0xff]   ;;  %p4354_p2 = scmp.ne.s32.totalorder %s3225_s5, %s4353_s8  ;;  %p4359_p4 = scmp.lt.s32.totalorder %s4353_s8, %s4353_s8 }
  0x59   :  { %v3754_v21 = vld [vmem:[#allocation7 + $0x2c4] ss:$16 sps:$4 sm:$0xff]   ;;  %v3749_v23 = vld [vmem:[#allocation7 + $0xc0] ss:$16 sps:$4 sm:$0xff]  }
  0x5a   :  { %3250 = vmatmul.mubr.msk.bf16.vlgmr.msra.gmra.mxu0 %vm232_vm0, %v107_v9  ;;  %3251 = vmatmul.mubr.msk.bf16.vlgmr.msra.gmra.mxu1 %vm232_vm0, %v107_v9  ;;  %v3751_v22 = vld [vmem:[#allocation7 + $0xc4] ss:$16 sps:$4 sm:$0xff]   ;;  %v3752_v24 = vld [vmem:[#allocation7 + $0x2c0] ss:$16 sps:$4 sm:$0xff]   ;;  %p4360_p5 = por %p4359_p4, %p4358_p3 }
  0x5b   :  { %3678 = vmatpush3.bf16.msra.mxu1 %v3735_v10  ;;  %3681 = vmatprep.mubr.msk.bf16.mxu1 %vm4399_vm1, %v4398_v12  ;;  %v3760_v25 = vld [vmem:[#allocation7 + $0x2a4] ss:$16 sps:$4 sm:$0xff]   ;;  %v3755_v27 = vld [vmem:[#allocation7 + $0xa0] ss:$16 sps:$4 sm:$0xff]  }
  0x5c   :  { %3679 = vmatprep.subr.bf16.mxu1 %v4398_v12  ;;  %331 = vmatpush1.bf16.msra.mxu0 %v3737_v13  ;;  %v3757_v26 = vld [vmem:[#allocation7 + $0xa4] ss:$16 sps:$4 sm:$0xff]   ;;  %v3758_v28 = vld [vmem:[#allocation7 + $0x2a0] ss:$16 sps:$4 sm:$0xff]   ;;  %p4361_p6 = pnand %p4360_p5, %p4354_p2 }
  0x5d   :  { %332 = vmatprep.subr.bf16.mxu0 %v3742_v14  ;;  %350 = vmatprep.mubr.bf16.mxu0 %v4397_v0  ;;  %v3766_v29 = vld [vmem:[#allocation7 + $0x284] ss:$16 sps:$4 sm:$0xff]   ;;  %v3761_v31 = vld [vmem:[#allocation7 + $0x80] ss:$16 sps:$4 sm:$0xff]  }
  0x5e   :  { %v3763_v30 = vld [vmem:[#allocation7 + $0x84] ss:$16 sps:$4 sm:$0xff]   ;;  %v3764_v32 = vld [vmem:[#allocation7 + $0x280] ss:$16 sps:$4 sm:$0xff]  }
  0x5f   :  { %3680 = vmatpush3.bf16.msra.mxu1 %v3736_v15  ;;  %v3772_v33 = vld [vmem:[#allocation7 + $0x264] ss:$16 sps:$4 sm:$0xff]   ;;  %v3767_v35 = vld [vmem:[#allocation7 + $0x60] ss:$16 sps:$4 sm:$0xff]  }
  0x60   :  { %333 = vmatpush1.bf16.msra.mxu0 %v3740_v16  ;;  %1819 = vmatprep.subr.bf16.mxu1 %v3748_v17  ;;  %v3769_v34 = vld [vmem:[#allocation7 + $0x64] ss:$16 sps:$4 sm:$0xff]   ;;  %v3770_v36 = vld [vmem:[#allocation7 + $0x260] ss:$16 sps:$4 sm:$0xff]  }
  0x61   :  { %1778 = vmatprep.subr.bf16.mxu0 %v3745_v18  ;;  %v3778_v37 = vld [vmem:[#allocation7 + $0x244] ss:$16 sps:$4 sm:$0xff]   ;;  %v3773_v39 = vld [vmem:[#allocation7 + $0x40] ss:$16 sps:$4 sm:$0xff]  }
  0x62   :  { %3682 = vmatmul.mubr.msk.bf16.vlgmr.msra.gmra.mxu1 %vm232_vm0, %v107_v9  ;;  %v3775_v38 = vld [vmem:[#allocation7 + $0x44] ss:$16 sps:$4 sm:$0xff]   ;;  %v3776_v40 = vld [vmem:[#allocation7 + $0x240] ss:$16 sps:$4 sm:$0xff]  }
  0x63   :  { %3252 = vmatmul.mubr.msk.bf16.vlgmr.msra.gmra.mxu0 %vm232_vm0, %v107_v9  ;;  %1820 = vmatpush1.bf16.msra.mxu1 %v3746_v20  ;;  %v3784_v41 = vld [vmem:[#allocation7 + $0x224] ss:$16 sps:$4 sm:$0xff]   ;;  %v3779_v43 = vld [vmem:[#allocation7 + $0x20] ss:$16 sps:$4 sm:$0xff]  }
  0x64   :  { %1779 = vmatpush1.bf16.msra.mxu0 %v3743_v19  ;;  %1821 = vmatprep.subr.bf16.mxu1 %v3754_v21  ;;  %v3781_v42 = vld [vmem:[#allocation7 + $0x24] ss:$16 sps:$4 sm:$0xff]   ;;  %v3782_v44 = vld [vmem:[#allocation7 + $0x220] ss:$16 sps:$4 sm:$0xff]   ;;  %v125_v21 = vlaneseq }
  0x65   :  { %1780 = vmatprep.subr.bf16.mxu0 %v3751_v22  ;;  %v3790_v45 = vld [vmem:[#allocation7 + $0x204] ss:$16 sps:$4 sm:$0xff]   ;;  %v3785_v47 = vld [vmem:[#allocation7] ss:$16 sps:$4 sm:$0xff]  }
  0x66   :  { %v3787_v46 = vld [vmem:[#allocation7 + $0x4] ss:$16 sps:$4 sm:$0xff]   ;;  %v3788_v48 = vld [vmem:[#allocation7 + $0x200] ss:$16 sps:$4 sm:$0xff]   ;;  %v4465_v22 = vshrl.u32 %v125_v21, 7 }
  0x67   :  { %1822 = vmatpush1.bf16.msra.mxu1 %v3752_v24  ;;  %v3796_v49 = vld [vmem:[#allocation7 + $0x3e4] ss:$16 sps:$4 sm:$0xff]   ;;  %v3791_v51 = vld [vmem:[#allocation7 + $0x1e0] ss:$16 sps:$4 sm:$0xff]  }
  0x68   :  { %1781 = vmatpush1.bf16.msra.mxu0 %v3749_v23  ;;  %1823 = vmatprep.subr.bf16.mxu1 %v3760_v25  ;;  %v3793_v50 = vld [vmem:[#allocation7 + $0x1e4] ss:$16 sps:$4 sm:$0xff]   ;;  %v3794_v52 = vld [vmem:[#allocation7 + $0x3e0] ss:$16 sps:$4 sm:$0xff]   ;;  %v4470_v24 = vsub.s32 0, %v4465_v22  ;;  %v4473_v25 = vsub.s32 2, %v4465_v22 }
  0x69   :  { %1782 = vmatprep.subr.bf16.mxu0 %v3757_v26  ;;  %v3802_v53 = vld [vmem:[#allocation7 + $0x3c4] ss:$16 sps:$4 sm:$0xff]   ;;  %v3800_v55 = vld [vmem:[#allocation7 + $0x3c0] ss:$16 sps:$4 sm:$0xff]   ;;  %v4476_v26 = vsub.s32 1, %v4465_v22 }
  0x6a   :  { %v3799_v54 = vld [vmem:[#allocation7 + $0x1c4] ss:$16 sps:$4 sm:$0xff]   ;;  %v3797_v56 = vld [vmem:[#allocation7 + $0x1c0] ss:$16 sps:$4 sm:$0xff]  }
  0x6b   :  { %1824 = vmatpush1.bf16.msra.mxu1 %v3758_v28  ;;  %v3808_v57 = vld [vmem:[#allocation7 + $0x3a4] ss:$16 sps:$4 sm:$0xff]   ;;  %v3806_v59 = vld [vmem:[#allocation7 + $0x3a0] ss:$16 sps:$4 sm:$0xff]  }
  0x6c   :  { %1783 = vmatpush1.bf16.msra.mxu0 %v3755_v27  ;;  %1825 = vmatprep.subr.bf16.mxu1 %v3766_v29  ;;  %v3805_v58 = vld [vmem:[#allocation7 + $0x1a4] ss:$16 sps:$4 sm:$0xff]   ;;  %v3803_v60 = vld [vmem:[#allocation7 + $0x1a0] ss:$16 sps:$4 sm:$0xff]   ;;  %v139_v27 = vsub.s32 3, %v4465_v22 }
  0x6d   :  { %1784 = vmatprep.subr.bf16.mxu0 %v3763_v30  ;;  %v3814_v61 = vld [vmem:[#allocation7 + $0x384] ss:$16 sps:$4 sm:$0xff]   ;;  %v3812_v63 = vld [vmem:[#allocation7 + $0x380] ss:$16 sps:$4 sm:$0xff]  }
  0x6e   :  { %v3811_v62 = vld [vmem:[#allocation7 + $0x184] ss:$16 sps:$4 sm:$0xff]   ;;  %v3809_v1 = vld [vmem:[#allocation7 + $0x180] ss:$16 sps:$4 sm:$0xff]  }
  0x6f   :  { %1826 = vmatpush1.bf16.msra.mxu1 %v3764_v32  ;;  %v3820_v2 = vld [vmem:[#allocation7 + $0x364] ss:$16 sps:$4 sm:$0xff]   ;;  %v3818_v4 = vld [vmem:[#allocation7 + $0x360] ss:$16 sps:$4 sm:$0xff]  }
  0x70   :  { %1785 = vmatpush1.bf16.msra.mxu0 %v3761_v31  ;;  %1827 = vmatprep.subr.bf16.mxu1 %v3772_v33  ;;  %v3817_v3 = vld [vmem:[#allocation7 + $0x164] ss:$16 sps:$4 sm:$0xff]   ;;  %v3815_v5 = vld [vmem:[#allocation7 + $0x160] ss:$16 sps:$4 sm:$0xff]  }
  0x71   :  { %1786 = vmatprep.subr.bf16.mxu0 %v3769_v34  ;;  %v3826_v6 = vld [vmem:[#allocation7 + $0x344] ss:$16 sps:$4 sm:$0xff]   ;;  %v3824_v8 = vld [vmem:[#allocation7 + $0x340] ss:$16 sps:$4 sm:$0xff]  }
  0x72   :  { %v3823_v7 = vld [vmem:[#allocation7 + $0x144] ss:$16 sps:$4 sm:$0xff]   ;;  %v3821_v9 = vld [vmem:[#allocation7 + $0x140] ss:$16 sps:$4 sm:$0xff]  }
  0x73   :  { %1828 = vmatpush1.bf16.msra.mxu1 %v3770_v36  ;;  %v3829_v10 = vld [vmem:[#allocation7 + $0x124] ss:$16 sps:$4 sm:$0xff]   ;;  %v3827_v13 = vld [vmem:[#allocation7 + $0x120] ss:$16 sps:$4 sm:$0xff]  }
  0x74   :  { %1787 = vmatpush1.bf16.msra.mxu0 %v3767_v35  ;;  %1829 = vmatprep.subr.bf16.mxu1 %v3778_v37  ;;  %v3832_v11 = vld [vmem:[#allocation7 + $0x324] ss:$16 sps:$4 sm:$0xff]   ;;  %v3830_v14 = vld [vmem:[#allocation7 + $0x320] ss:$16 sps:$4 sm:$0xff]  }
  0x75   :  { %1788 = vmatprep.subr.bf16.mxu0 %v3775_v38  ;;  %v3835_v15 = vld [vmem:[#allocation7 + $0x104] ss:$16 sps:$4 sm:$0xff]   ;;  %v3833_v17 = vld [vmem:[#allocation7 + $0x100] ss:$16 sps:$4 sm:$0xff]  }
  0x76   :  { %v3838_v16 = vld [vmem:[#allocation7 + $0x304] ss:$16 sps:$4 sm:$0xff]   ;;  %v3836_v18 = vld [vmem:[#allocation7 + $0x300] ss:$16 sps:$4 sm:$0xff]  }
  0x77   :  { %1830 = vmatpush1.bf16.msra.mxu1 %v3776_v40  ;;  %v3841_v19 = vld [vmem:[#allocation7 + $0x4e4] ss:$16 sps:$4 sm:$0xff]   ;;  %v3866_v21 = vld [vmem:[#allocation7 + $0x660] ss:$16 sps:$4 sm:$0xff]  }
  0x78   :  { %1789 = vmatpush1.bf16.msra.mxu0 %v3773_v39  ;;  %1831 = vmatprep.subr.bf16.mxu1 %v3784_v41  ;;  %v3844_v20 = vld [vmem:[#allocation7 + $0x6e4] ss:$16 sps:$4 sm:$0xff]  }
  0x79   :  { %1790 = vmatprep.subr.bf16.mxu0 %v3781_v42  ;;  %v4467_v23 = vld [vmem:[#allocation11] sm:$0xff] }
  0x7a   :  { %v128_v28 = vrot.slane %v4467_v23, %v4470_v24  ;;  %v136_v29 = vrot.slane %v4467_v23, %v4473_v25  ;;  %v132_v30 = vrot.slane %v4467_v23, %v4476_v26  ;;  %v140_v31 = vrot.slane %v4467_v23, %v139_v27 }
  0x7b   :  { %1832 = vmatpush1.bf16.msra.mxu1 %v3782_v44  ;;  %v147_v44 = vsub.s32 5, %v4465_v22 }
  0x7c   :  { %1791 = vmatpush1.bf16.msra.mxu0 %v3779_v43  ;;  %1833 = vmatprep.subr.bf16.mxu1 %v3790_v45 }
  0x7d   :  { %1792 = vmatprep.subr.bf16.mxu0 %v3787_v46 }
  0x7f   :  { %1834 = vmatpush1.bf16.msra.mxu1 %v3788_v48 }
  0x80   :  { %1793 = vmatpush1.bf16.msra.mxu0 %v3785_v47  ;;  %1835 = vmatprep.subr.bf16.mxu1 %v3796_v49 }
  0x81   :  { %1794 = vmatprep.subr.bf16.mxu0 %v3793_v50 }
  0x83   :  { %1836 = vmatpush2.bf16.msra.mxu1 %v3794_v52  ;;  %v3839_v52 = vld [vmem:[#allocation7 + $0x4e0] ss:$16 sps:$4 sm:$0xff]  }
  0x84   :  { %1795 = vmatpush2.bf16.msra.mxu0 %v3791_v51  ;;  %1837 = vmatprep.subr.bf16.mxu1 %v3802_v53  ;;  %v3842_v53 = vld [vmem:[#allocation7 + $0x6e0] ss:$16 sps:$4 sm:$0xff]  }
  0x85   :  { %1796 = vmatprep.subr.bf16.mxu0 %v3799_v54 }
  0x87   :  { %1838 = vmatpush2.bf16.msra.mxu1 %v3800_v55  ;;  %v3847_v55 = vld [vmem:[#allocation7 + $0x4c4] ss:$16 sps:$4 sm:$0xff]  }
  0x88   :  { %1797 = vmatpush2.bf16.msra.mxu0 %v3797_v56  ;;  %1839 = vmatprep.subr.bf16.mxu1 %v3808_v57  ;;  %v3850_v56 = vld [vmem:[#allocation7 + $0x6c4] ss:$16 sps:$4 sm:$0xff]  }
  0x89   :  { %1798 = vmatprep.subr.bf16.mxu0 %v3805_v58  ;;  %v148_v58 = vrot.slane %v4467_v23, %v147_v44  ;;  %v3892_v44 = vld [vmem:[#allocation7 + $0xec] ss:$16 sps:$4 sm:$0xff]  }
  0x8b   :  { %1840 = vmatpush2.bf16.msra.mxu1 %v3806_v59 }
  0x8c   :  { %1799 = vmatpush2.bf16.msra.mxu0 %v3803_v60  ;;  %1841 = vmatprep.subr.bf16.mxu1 %v3814_v61  ;;  %v3845_v61 = vld [vmem:[#allocation7 + $0x4c0] ss:$16 sps:$4 sm:$0xff]  }
  0x8d   :  { %1800 = vmatprep.subr.bf16.mxu0 %v3811_v62  ;;  %v3848_v62 = vld [vmem:[#allocation7 + $0x6c0] ss:$16 sps:$4 sm:$0xff]  }
  0x8f   :  { %1842 = vmatpush2.bf16.msra.mxu1 %v3812_v63 }
  0x90   :  { %1801 = vmatpush2.bf16.msra.mxu0 %v3809_v1  ;;  %1843 = vmatprep.subr.bf16.mxu1 %v3820_v2  ;;  %v3853_v1 = vld [vmem:[#allocation7 + $0x4a4] ss:$16 sps:$4 sm:$0xff]  }
  0x91   :  { %1802 = vmatprep.subr.bf16.mxu0 %v3817_v3  ;;  %v3856_v2 = vld [vmem:[#allocation7 + $0x6a4] ss:$16 sps:$4 sm:$0xff]  }
  0x93   :  { %1844 = vmatpush2.bf16.msra.mxu1 %v3818_v4 }
  0x94   :  { %1803 = vmatpush2.bf16.msra.mxu0 %v3815_v5  ;;  %1845 = vmatprep.subr.bf16.mxu1 %v3826_v6 }
  0x95   :  { %1804 = vmatprep.subr.bf16.mxu0 %v3823_v7 }
  0x97   :  { %1846 = vmatpush2.bf16.msra.mxu1 %v3824_v8  ;;  %v3851_v8 = vld [vmem:[#allocation7 + $0x4a0] ss:$16 sps:$4 sm:$0xff]  }
  0x98   :  { %1805 = vmatpush2.bf16.msra.mxu0 %v3821_v9  ;;  %1847 = vmatprep.subr.bf16.mxu1 %v3832_v11  ;;  %v3854_v9 = vld [vmem:[#allocation7 + $0x6a0] ss:$16 sps:$4 sm:$0xff]   ;;  %v3859_v11 = vld [vmem:[#allocation7 + $0x484] ss:$16 sps:$4 sm:$0xff]  }
  0x99   :  { %1806 = vmatprep.subr.bf16.mxu0 %v3829_v10 }
  0x9b   :  { %1848 = vmatpush2.bf16.msra.mxu1 %v3830_v14 }
  0x9c   :  { %1807 = vmatpush2.bf16.msra.mxu0 %v3827_v13  ;;  %1849 = vmatprep.subr.bf16.mxu1 %v3838_v16  ;;  %v3862_v13 = vld [vmem:[#allocation7 + $0x684] ss:$16 sps:$4 sm:$0xff]   ;;  %v3860_v16 = vld [vmem:[#allocation7 + $0x680] ss:$16 sps:$4 sm:$0xff]  }
  0x9d   :  { %1808 = vmatprep.subr.bf16.mxu0 %v3835_v15  ;;  %v3857_v15 = vld [vmem:[#allocation7 + $0x480] ss:$16 sps:$4 sm:$0xff]  }
  0x9f   :  { %1850 = vmatpush2.bf16.msra.mxu1 %v3836_v18  ;;  %v3868_v18 = vld [vmem:[#allocation7 + $0x664] ss:$16 sps:$4 sm:$0xff]  }
  0xa0   :  { %1809 = vmatpush2.bf16.msra.mxu0 %v3833_v17  ;;  %1901 = vmatprep.subr.bf16.mxu1 %v3844_v20  ;;  %v3865_v17 = vld [vmem:[#allocation7 + $0x464] ss:$16 sps:$4 sm:$0xff]   ;;  %v3863_v20 = vld [vmem:[#allocation7 + $0x460] ss:$16 sps:$4 sm:$0xff]  }
  0xa1   :  { %1860 = vmatprep.subr.bf16.mxu0 %v3841_v19  ;;  %v151_v19 = vsub.s32 6, %v4465_v22 }
 0x11a   :  { %v270_v32 = vpop.f32.mrf.mxu0  ;;  %v311_v33 = vpop.f32.mrf.mxu1 }
 0x11b   :  { %v271_v34 = vadd.f32 %v270_v32, %v128_v28  ;;  %v312_v35 = vadd.f32 %v311_v33, %v136_v29  ;;  %v3871_v28 = vld [vmem:[#allocation7 + $0x444] ss:$16 sps:$4 sm:$0xff]   ;;  %v3872_v32 = vld [vmem:[#allocation7 + $0x640] ss:$16 sps:$4 sm:$0xff]  }
 0x11c   :  { %v272_v36 = vpop.f32.mrf.mxu0  ;;  %v313_v37 = vpop.f32.mrf.mxu1  ;;  %v3874_v29 = vld [vmem:[#allocation7 + $0x644] ss:$16 sps:$4 sm:$0xff]  }
 0x11d   :  { %v399_v38 = vmax.f32 %v271_v34, 0.0  ;;  %v273_v39 = vadd.f32 %v272_v36, %v132_v30  ;;  %v314_v40 = vadd.f32 %v313_v37, %v140_v31  ;;  %v401_v41 = vmax.f32 %v312_v35, 0.0  ;;  %v3869_v31 = vld [vmem:[#allocation7 + $0x440] ss:$16 sps:$4 sm:$0xff]   ;;  %v3877_v33 = vld [vmem:[#allocation7 + $0x424] ss:$16 sps:$4 sm:$0xff]  }
 0x11e   :  { %v274_v42 = vpop.f32.mrf.mxu0  ;;  %v315_v43 = vpop.f32.mrf.mxu1  ;;  %v152_v30 = vrot.slane %v4467_v23, %v151_v19  ;;  %v3880_v34 = vld [vmem:[#allocation7 + $0x624] ss:$16 sps:$4 sm:$0xff]   ;;  %v3875_v36 = vld [vmem:[#allocation7 + $0x420] ss:$16 sps:$4 sm:$0xff]   ;;  %v3934_v19 = vld [vmem:[#allocation7 + $0xc] ss:$16 sps:$4 sm:$0xff]  }
 0x11f   :  { %v400_v45 = vmax.f32 %v273_v39, 0.0  ;;  %v402_v46 = vmax.f32 %v314_v40, 0.0  ;;  %v4489_v47 = vpack.c.bf16 %v399_v38, %v399_v38  ;;  %v4495_v54 = vpack.c.bf16 %v401_v41, %v401_v41  ;;  %v3878_v37 = vld [vmem:[#allocation7 + $0x620] ss:$16 sps:$4 sm:$0xff]   ;;  %v3883_v38 = vld [vmem:[#allocation7 + $0x404] ss:$16 sps:$4 sm:$0xff]  }
 0x120   :  { %v275_v48 = vpop.f32.mrf.mxu0  ;;  %v316_v49 = vpop.f32.mrf.mxu1  ;;  %v3886_v39 = vld [vmem:[#allocation7 + $0x604] ss:$16 sps:$4 sm:$0xff]   ;;  %v3881_v41 = vld [vmem:[#allocation7 + $0x400] ss:$16 sps:$4 sm:$0xff]  }
 0x121   :  { %v4491_v50 = vpack.c.bf16 %v400_v45, %v400_v45  ;;  %v4493_v51 = vpack.c.bf16 %v402_v46, %v402_v46  ;;  %v3884_v42 = vld [vmem:[#allocation7 + $0x600] ss:$16 sps:$4 sm:$0xff]   ;;  %v3889_v43 = vld [vmem:[#allocation7 + $0x5e4] ss:$16 sps:$4 sm:$0xff]   ;;  %v3890_v48 = vld [vmem:[#allocation7 + $0xe8] ss:$16 sps:$4 sm:$0xff]  }
 0x122   :  { %v393_v57 = vpop.f32.mrf.mxu1  ;;  %v3887_v46 = vld [vmem:[#allocation7 + $0x5e0] ss:$16 sps:$4 sm:$0xff]   ;;  %v3895_v49 = vld [vmem:[#allocation7 + $0x5c4] ss:$16 sps:$4 sm:$0xff]  }
 0x123   :  { %1810 = vmatprep.mubr.bf16.mxu0 %v4491_v50  ;;  %1851 = vmatprep.mubr.bf16.mxu1 %v4493_v51  ;;  %v4500_v59 = vpop.f32.mrf.mxu0  ;;  %v394_v35 = vadd.f32 %v393_v57, %v152_v30  ;;  %v3904_v57 = vld [vmem:[#allocation7 + $0xac] ss:$16 sps:$4 sm:$0xff]  }
 0x124   :  { %1811 = vmatmul.mubr.bf16.vlgmr.msra.gmra.mxu0 %v4489_v47  ;;  %1852 = vmatmul.mubr.bf16.vlgmr.msra.gmra.mxu1 %v4495_v54  ;;  %v3683_v60 = vpop.f32.mrf.mxu1 }
 0x125   :  { %1861 = vmatpush1.bf16.msra.mxu0 %v3839_v52  ;;  %1902 = vmatpush1.bf16.msra.mxu1 %v3842_v53  ;;  %v354_v63 = vpop.f32.mrf.mxu0  ;;  %v405_v40 = vmax.f32 %v394_v35, 0.0  ;;  %v3898_v52 = vld [vmem:[#allocation7 + $0xcc] ss:$16 sps:$4 sm:$0xff]   ;;  %v3893_v53 = vld [vmem:[#allocation7 + $0x5c0] ss:$16 sps:$4 sm:$0xff]  }
 0x126   :  { %1862 = vmatprep.subr.bf16.mxu0 %v3847_v55  ;;  %1903 = vmatprep.subr.bf16.mxu1 %v3850_v56  ;;  %v396_v3 = vpop.f32.mrf.mxu1  ;;  %v355_v4 = vadd.f32 %v354_v63, %v148_v58  ;;  %v3896_v55 = vld [vmem:[#allocation7 + $0xc8] ss:$16 sps:$4 sm:$0xff]   ;;  %v3901_v56 = vld [vmem:[#allocation7 + $0x5a4] ss:$16 sps:$4 sm:$0xff]   ;;  %v3899_v58 = vld [vmem:[#allocation7 + $0x5a0] ss:$16 sps:$4 sm:$0xff]  }
 0x127   :  { %1933 = vmatprep.mubr.bf16.mxu1 %v4397_v0  ;;  %v356_v5 = vpop.f32.mrf.mxu0  ;;  %v4510_v45 = vpack.c.bf16 %v405_v40, %v405_v40  ;;  %v3902_v60 = vld [vmem:[#allocation7 + $0xa8] ss:$16 sps:$4 sm:$0xff]   ;;  %v3905_v63 = vld [vmem:[#allocation7 + $0x580] ss:$16 sps:$4 sm:$0xff]   ;;  %v143_v3 = vsub.s32 4, %v4465_v22 }
 0x128   :  { %v3684_v6 = vpop.f32.mrf.mxu1  ;;  %v404_v7 = vmax.f32 %v355_v4, 0.0  ;;  %v3911_v4 = vld [vmem:[#allocation7 + $0x560] ss:$16 sps:$4 sm:$0xff]   ;;  %v3914_v5 = vld [vmem:[#allocation7 + $0x68] ss:$16 sps:$4 sm:$0xff]  }
 0x129   :  { %1863 = vmatpush1.bf16.msra.mxu0 %v3845_v61  ;;  %1904 = vmatpush1.bf16.msra.mxu1 %v3848_v62  ;;  %v357_v10 = vpop.f32.mrf.mxu0  ;;  %v3907_v61 = vld [vmem:[#allocation7 + $0x584] ss:$16 sps:$4 sm:$0xff]   ;;  %v3910_v62 = vld [vmem:[#allocation7 + $0x8c] ss:$16 sps:$4 sm:$0xff]   ;;  %v3944_v35 = vld [vmem:[#allocation7 + $0x2c8] ss:$16 sps:$4 sm:$0xff]  }
 0x12a   :  { %1864 = vmatprep.subr.bf16.mxu0 %v3853_v1  ;;  %1905 = vmatprep.subr.bf16.mxu1 %v3856_v2  ;;  %v4505_v14 = vpack.c.bf16 %v404_v7, %v404_v7  ;;  %v3908_v1 = vld [vmem:[#allocation7 + $0x88] ss:$16 sps:$4 sm:$0xff]   ;;  %v3913_v2 = vld [vmem:[#allocation7 + $0x564] ss:$16 sps:$4 sm:$0xff]   ;;  %v3922_v7 = vld [vmem:[#allocation7 + $0x4c] ss:$16 sps:$4 sm:$0xff]  }
 0x12b   :  { %v3919_v6 = vld [vmem:[#allocation7 + $0x544] ss:$16 sps:$4 sm:$0xff]   ;;  %v3920_v10 = vld [vmem:[#allocation7 + $0x48] ss:$16 sps:$4 sm:$0xff]   ;;  %v3955_v40 = vld [vmem:[#allocation7 + $0x18c] ss:$16 sps:$4 sm:$0xff]  }
 0x12c   :  { %1892 = vmatprep.mubr.bf16.mxu0 %v4505_v14 }
 0x12d   :  { %1865 = vmatpush1.bf16.msra.mxu0 %v3851_v8  ;;  %1906 = vmatpush1.bf16.msra.mxu1 %v3854_v9  ;;  %v144_v8 = vrot.slane %v4467_v23, %v143_v3  ;;  %v3917_v9 = vld [vmem:[#allocation7 + $0x540] ss:$16 sps:$4 sm:$0xff]   ;;  %v3983_v3 = vld [vmem:[#allocation7 + $0x3e8] ss:$16 sps:$4 sm:$0xff]  }
 0x12e   :  { %1866 = vmatprep.subr.bf16.mxu0 %v3859_v11  ;;  %1907 = vmatprep.subr.bf16.mxu1 %v3862_v13  ;;  %v3925_v11 = vld [vmem:[#allocation7 + $0x524] ss:$16 sps:$4 sm:$0xff]   ;;  %v3928_v13 = vld [vmem:[#allocation7 + $0x2c] ss:$16 sps:$4 sm:$0xff]   ;;  %v3929_v23 = vld [vmem:[#allocation7 + $0x500] ss:$16 sps:$4 sm:$0xff]  }
 0x131   :  { %1867 = vmatpush1.bf16.msra.mxu0 %v3857_v15  ;;  %1908 = vmatpush1.bf16.msra.mxu1 %v3860_v16  ;;  %v353_v15 = vadd.f32 %v4500_v59, %v144_v8  ;;  %v3923_v16 = vld [vmem:[#allocation7 + $0x520] ss:$16 sps:$4 sm:$0xff]   ;;  %v3935_v59 = vld [vmem:[#allocation7 + $0x1e8] ss:$16 sps:$4 sm:$0xff]  }
 0x132   :  { %1868 = vmatprep.subr.bf16.mxu0 %v3865_v17  ;;  %1909 = vmatprep.subr.bf16.mxu1 %v3868_v18  ;;  %v3926_v17 = vld [vmem:[#allocation7 + $0x28] ss:$16 sps:$4 sm:$0xff]   ;;  %v3931_v18 = vld [vmem:[#allocation7 + $0x504] ss:$16 sps:$4 sm:$0xff]  }
 0x133   :  { %v3992_v8 = vld [vmem:[#allocation7 + $0x4c8] ss:$16 sps:$4 sm:$0xff]  }
 0x135   :  { %1869 = vmatpush1.bf16.msra.mxu0 %v3863_v20  ;;  %1910 = vmatpush1.bf16.msra.mxu1 %v3866_v21  ;;  %v403_v20 = vmax.f32 %v353_v15, 0.0  ;;  %v3932_v21 = vld [vmem:[#allocation7 + $0x8] ss:$16 sps:$4 sm:$0xff]   ;;  %v4003_v15 = vld [vmem:[#allocation7 + $0x38c] ss:$16 sps:$4 sm:$0xff]  }
 0x136   :  { %1870 = vmatprep.subr.bf16.mxu0 %v3871_v28  ;;  %1911 = vmatprep.subr.bf16.mxu1 %v3874_v29  ;;  %v3937_v28 = vld [vmem:[#allocation7 + $0x1ec] ss:$16 sps:$4 sm:$0xff]  }
 0x137   :  { %v3940_v29 = vld [vmem:[#allocation7 + $0x2ec] ss:$16 sps:$4 sm:$0xff]   ;;  %v4517_v30 = vpack.c.bf16 %v403_v20, %v403_v20  ;;  %v4010_v20 = vld [vmem:[#allocation7 + $0x468] ss:$16 sps:$4 sm:$0xff]  }
 0x139   :  { %1871 = vmatpush1.bf16.msra.mxu0 %v3869_v31  ;;  %1912 = vmatpush1.bf16.msra.mxu1 %v3872_v32  ;;  %v3938_v31 = vld [vmem:[#allocation7 + $0x2e8] ss:$16 sps:$4 sm:$0xff]   ;;  %v3943_v32 = vld [vmem:[#allocation7 + $0x1cc] ss:$16 sps:$4 sm:$0xff]  }
 0x13a   :  { %1872 = vmatprep.subr.bf16.mxu0 %v3877_v33  ;;  %1913 = vmatprep.subr.bf16.mxu1 %v3880_v34  ;;  %v3946_v33 = vld [vmem:[#allocation7 + $0x2cc] ss:$16 sps:$4 sm:$0xff]   ;;  %v3941_v34 = vld [vmem:[#allocation7 + $0x1c8] ss:$16 sps:$4 sm:$0xff]  }
 0x13d   :  { %1873 = vmatpush1.bf16.msra.mxu0 %v3875_v36  ;;  %1914 = vmatpush1.bf16.msra.mxu1 %v3878_v37  ;;  %v3949_v36 = vld [vmem:[#allocation7 + $0x1ac] ss:$16 sps:$4 sm:$0xff]  }
 0x13e   :  { %1874 = vmatprep.subr.bf16.mxu0 %v3883_v38  ;;  %1915 = vmatprep.subr.bf16.mxu1 %v3886_v39  ;;  %v3952_v37 = vld [vmem:[#allocation7 + $0x2ac] ss:$16 sps:$4 sm:$0xff]   ;;  %v3947_v38 = vld [vmem:[#allocation7 + $0x1a8] ss:$16 sps:$4 sm:$0xff]  }
 0x13f   :  { %v3950_v39 = vld [vmem:[#allocation7 + $0x2a8] ss:$16 sps:$4 sm:$0xff]  }
 0x141   :  { %1875 = vmatpush1.bf16.msra.mxu0 %v3881_v41  ;;  %1916 = vmatpush1.bf16.msra.mxu1 %v3884_v42  ;;  %v3958_v41 = vld [vmem:[#allocation7 + $0x28c] ss:$16 sps:$4 sm:$0xff]   ;;  %v3953_v42 = vld [vmem:[#allocation7 + $0x188] ss:$16 sps:$4 sm:$0xff]  }
 0x142   :  { %1876 = vmatprep.subr.bf16.mxu0 %v3889_v43  ;;  %1942 = vmatprep.subr.bf16.mxu1 %v3892_v44  ;;  %v3956_v43 = vld [vmem:[#allocation7 + $0x288] ss:$16 sps:$4 sm:$0xff]   ;;  %v3961_v44 = vld [vmem:[#allocation7 + $0x16c] ss:$16 sps:$4 sm:$0xff]  }
 0x144   :  { %1934 = vmatmul.mubr.bf16.vlgmr.msra.gmra.mxu1 %v4510_v45 }
 0x145   :  { %1877 = vmatpush2.bf16.msra.mxu0 %v3887_v46  ;;  %1943 = vmatpush1.bf16.msra.mxu1 %v3890_v48  ;;  %v3959_v46 = vld [vmem:[#allocation7 + $0x168] ss:$16 sps:$4 sm:$0xff]  }
 0x146   :  { %1974 = vmatprep.mubr.bf16.mxu1 %v4491_v50  ;;  %1878 = vmatprep.subr.bf16.mxu0 %v3895_v49  ;;  %v3916_v50 = vld [vmem:[#allocation7 + $0x6c] ss:$16 sps:$4 sm:$0xff]   ;;  %v3962_v48 = vld [vmem:[#allocation7 + $0x268] ss:$16 sps:$4 sm:$0xff]  }
 0x147   :  { %1944 = vmatprep.subr.bf16.mxu1 %v3898_v52  ;;  %v3967_v49 = vld [vmem:[#allocation7 + $0x14c] ss:$16 sps:$4 sm:$0xff]  }
 0x148   :  { %v3970_v52 = vld [vmem:[#allocation7 + $0x24c] ss:$16 sps:$4 sm:$0xff]  }
 0x149   :  { %1879 = vmatpush2.bf16.msra.mxu0 %v3893_v53  ;;  %1945 = vmatpush1.bf16.msra.mxu1 %v3896_v55  ;;  %v3965_v53 = vld [vmem:[#allocation7 + $0x148] ss:$16 sps:$4 sm:$0xff]  }
 0x14a   :  { %1880 = vmatprep.subr.bf16.mxu0 %v3901_v56  ;;  %1946 = vmatprep.subr.bf16.mxu1 %v3904_v57  ;;  %v3968_v55 = vld [vmem:[#allocation7 + $0x248] ss:$16 sps:$4 sm:$0xff]   ;;  %v3973_v56 = vld [vmem:[#allocation7 + $0x12c] ss:$16 sps:$4 sm:$0xff]  }
 0x14b   :  { %v3976_v57 = vld [vmem:[#allocation7 + $0x22c] ss:$16 sps:$4 sm:$0xff]  }
 0x14d   :  { %1881 = vmatpush2.bf16.msra.mxu0 %v3899_v58  ;;  %1947 = vmatpush1.bf16.msra.mxu1 %v3902_v60  ;;  %v3971_v58 = vld [vmem:[#allocation7 + $0x128] ss:$16 sps:$4 sm:$0xff]  }
 0x14e   :  { %1882 = vmatprep.subr.bf16.mxu0 %v3907_v61  ;;  %1948 = vmatprep.subr.bf16.mxu1 %v3910_v62  ;;  %v3974_v60 = vld [vmem:[#allocation7 + $0x228] ss:$16 sps:$4 sm:$0xff]   ;;  %v3979_v61 = vld [vmem:[#allocation7 + $0x10c] ss:$16 sps:$4 sm:$0xff]  }
 0x14f   :  { %v3982_v62 = vld [vmem:[#allocation7 + $0x20c] ss:$16 sps:$4 sm:$0xff]  }
 0x151   :  { %1883 = vmatpush2.bf16.msra.mxu0 %v3905_v63  ;;  %1949 = vmatpush1.bf16.msra.mxu1 %v3908_v1  ;;  %v3977_v63 = vld [vmem:[#allocation7 + $0x108] ss:$16 sps:$4 sm:$0xff]  }
 0x152   :  { %1884 = vmatprep.subr.bf16.mxu0 %v3913_v2  ;;  %1950 = vmatprep.subr.bf16.mxu1 %v3916_v50  ;;  %v3980_v1 = vld [vmem:[#allocation7 + $0x208] ss:$16 sps:$4 sm:$0xff]   ;;  %v3985_v2 = vld [vmem:[#allocation7 + $0x3ec] ss:$16 sps:$4 sm:$0xff]  }
 0x153   :  { %v3988_v50 = vld [vmem:[#allocation7 + $0x4ec] ss:$16 sps:$4 sm:$0xff]  }
 0x155   :  { %1885 = vmatpush2.bf16.msra.mxu0 %v3911_v4  ;;  %1951 = vmatpush1.bf16.msra.mxu1 %v3914_v5  ;;  %v3986_v4 = vld [vmem:[#allocation7 + $0x4e8] ss:$16 sps:$4 sm:$0xff]   ;;  %v3991_v5 = vld [vmem:[#allocation7 + $0x3cc] ss:$16 sps:$4 sm:$0xff]  }
 0x156   :  { %1886 = vmatprep.subr.bf16.mxu0 %v3919_v6  ;;  %1952 = vmatprep.subr.bf16.mxu1 %v3922_v7  ;;  %v3994_v6 = vld [vmem:[#allocation7 + $0x4cc] ss:$16 sps:$4 sm:$0xff]   ;;  %v3989_v7 = vld [vmem:[#allocation7 + $0x3c8] ss:$16 sps:$4 sm:$0xff]  }
 0x159   :  { %1887 = vmatpush2.bf16.msra.mxu0 %v3917_v9  ;;  %1953 = vmatpush1.bf16.msra.mxu1 %v3920_v10  ;;  %v3997_v9 = vld [vmem:[#allocation7 + $0x3ac] ss:$16 sps:$4 sm:$0xff]  }
 0x15a   :  { %1888 = vmatprep.subr.bf16.mxu0 %v3925_v11  ;;  %1954 = vmatprep.subr.bf16.mxu1 %v3928_v13  ;;  %v4000_v10 = vld [vmem:[#allocation7 + $0x4ac] ss:$16 sps:$4 sm:$0xff]   ;;  %v3995_v11 = vld [vmem:[#allocation7 + $0x3a8] ss:$16 sps:$4 sm:$0xff]  }
 0x15b   :  { %v3998_v13 = vld [vmem:[#allocation7 + $0x4a8] ss:$16 sps:$4 sm:$0xff]  }
 0x15d   :  { %1889 = vmatpush2.bf16.msra.mxu0 %v3923_v16  ;;  %1955 = vmatpush1.bf16.msra.mxu1 %v3926_v17  ;;  %v4006_v16 = vld [vmem:[#allocation7 + $0x48c] ss:$16 sps:$4 sm:$0xff]   ;;  %v4004_v17 = vld [vmem:[#allocation7 + $0x488] ss:$16 sps:$4 sm:$0xff]  }
 0x15e   :  { %1890 = vmatprep.subr.bf16.mxu0 %v3931_v18  ;;  %1956 = vmatprep.subr.bf16.mxu1 %v3934_v19  ;;  %v4009_v18 = vld [vmem:[#allocation7 + $0x36c] ss:$16 sps:$4 sm:$0xff]   ;;  %v4007_v19 = vld [vmem:[#allocation7 + $0x368] ss:$16 sps:$4 sm:$0xff]  }
 0x161   :  { %1891 = vmatpush2.bf16.msra.mxu0 %v3929_v23  ;;  %1957 = vmatpush1.bf16.msra.mxu1 %v3932_v21  ;;  %v4015_v23 = vld [vmem:[#allocation7 + $0x34c] ss:$16 sps:$4 sm:$0xff]  }
 0x162   :  { %1958 = vmatprep.subr.bf16.mxu1 %v3937_v28  ;;  %1983 = vmatprep.subr.bf16.mxu0 %v3940_v29  ;;  %v4018_v21 = vld [vmem:[#allocation7 + $0x44c] ss:$16 sps:$4 sm:$0xff]   ;;  %v4013_v28 = vld [vmem:[#allocation7 + $0x348] ss:$16 sps:$4 sm:$0xff]  }
 0x163   :  { %v4016_v29 = vld [vmem:[#allocation7 + $0x448] ss:$16 sps:$4 sm:$0xff]  }
 0x164   :  { %1893 = vmatmul.mubr.bf16.vlgmr.msra.gmra.mxu0 %v4517_v30 }
 0x165   :  { %1959 = vmatpush2.bf16.msra.mxu1 %v3935_v59  ;;  %1984 = vmatpush1.bf16.msra.mxu0 %v3938_v31  ;;  %v4021_v59 = vld [vmem:[#allocation7 + $0x32c] ss:$16 sps:$4 sm:$0xff]  }
 0x166   :  { %2015 = vmatprep.mubr.bf16.mxu0 %v4493_v51  ;;  %1960 = vmatprep.subr.bf16.mxu1 %v3943_v32  ;;  %v3964_v51 = vld [vmem:[#allocation7 + $0x26c] ss:$16 sps:$4 sm:$0xff]   ;;  %v4019_v32 = vld [vmem:[#allocation7 + $0x328] ss:$16 sps:$4 sm:$0xff]  }
 0x167   :  { %1985 = vmatprep.subr.bf16.mxu0 %v3946_v33  ;;  %v4024_v31 = vld [vmem:[#allocation7 + $0x42c] ss:$16 sps:$4 sm:$0xff]   ;;  %v4022_v33 = vld [vmem:[#allocation7 + $0x428] ss:$16 sps:$4 sm:$0xff]  }
 0x169   :  { %1961 = vmatpush2.bf16.msra.mxu1 %v3941_v34  ;;  %1986 = vmatpush1.bf16.msra.mxu0 %v3944_v35  ;;  %v4027_v34 = vld [vmem:[#allocation7 + $0x30c] ss:$16 sps:$4 sm:$0xff]  }
 0x16a   :  { %1962 = vmatprep.subr.bf16.mxu1 %v3949_v36  ;;  %1987 = vmatprep.subr.bf16.mxu0 %v3952_v37  ;;  %v4030_v35 = vld [vmem:[#allocation7 + $0x40c] ss:$16 sps:$4 sm:$0xff]   ;;  %v4025_v36 = vld [vmem:[#allocation7 + $0x308] ss:$16 sps:$4 sm:$0xff]  }
 0x16b   :  { %v4028_v37 = vld [vmem:[#allocation7 + $0x408] ss:$16 sps:$4 sm:$0xff]  }
 0x16d   :  { %1963 = vmatpush2.bf16.msra.mxu1 %v3947_v38  ;;  %1988 = vmatpush1.bf16.msra.mxu0 %v3950_v39  ;;  %v4033_v38 = vld [vmem:[#allocation7 + $0x5ec] ss:$16 sps:$4 sm:$0xff]  }
 0x16e   :  { %1964 = vmatprep.subr.bf16.mxu1 %v3955_v40  ;;  %1989 = vmatprep.subr.bf16.mxu0 %v3958_v41  ;;  %v4036_v39 = vld [vmem:[#allocation7 + $0x6ec] ss:$16 sps:$4 sm:$0xff]   ;;  %v4031_v40 = vld [vmem:[#allocation7 + $0x5e8] ss:$16 sps:$4 sm:$0xff]  }
 0x16f   :  { %v4034_v41 = vld [vmem:[#allocation7 + $0x6e8] ss:$16 sps:$4 sm:$0xff]  }
 0x171   :  { %1965 = vmatpush2.bf16.msra.mxu1 %v3953_v42  ;;  %1990 = vmatpush1.bf16.msra.mxu0 %v3956_v43  ;;  %v4039_v42 = vld [vmem:[#allocation7 + $0x5cc] ss:$16 sps:$4 sm:$0xff]  }
 0x172   :  { %1966 = vmatprep.subr.bf16.mxu1 %v3961_v44  ;;  %1991 = vmatprep.subr.bf16.mxu0 %v3964_v51  ;;  %v4042_v43 = vld [vmem:[#allocation7 + $0x6cc] ss:$16 sps:$4 sm:$0xff]   ;;  %v4037_v44 = vld [vmem:[#allocation7 + $0x5c8] ss:$16 sps:$4 sm:$0xff]  }
 0x173   :  { %v4040_v51 = vld [vmem:[#allocation7 + $0x6c8] ss:$16 sps:$4 sm:$0xff]  }
 0x175   :  { %1967 = vmatpush2.bf16.msra.mxu1 %v3959_v46  ;;  %1992 = vmatpush1.bf16.msra.mxu0 %v3962_v48  ;;  %v4045_v46 = vld [vmem:[#allocation7 + $0x5ac] ss:$16 sps:$4 sm:$0xff]  }
 0x176   :  { %1968 = vmatprep.subr.bf16.mxu1 %v3967_v49  ;;  %1993 = vmatprep.subr.bf16.mxu0 %v3970_v52  ;;  %v4048_v48 = vld [vmem:[#allocation7 + $0x6ac] ss:$16 sps:$4 sm:$0xff]   ;;  %v4043_v49 = vld [vmem:[#allocation7 + $0x5a8] ss:$16 sps:$4 sm:$0xff]  }
 0x177   :  { %v4046_v52 = vld [vmem:[#allocation7 + $0x6a8] ss:$16 sps:$4 sm:$0xff]  }
 0x179   :  { %1969 = vmatpush2.bf16.msra.mxu1 %v3965_v53  ;;  %1994 = vmatpush1.bf16.msra.mxu0 %v3968_v55  ;;  %v4051_v53 = vld [vmem:[#allocation7 + $0x58c] ss:$16 sps:$4 sm:$0xff]  }
 0x17a   :  { %1970 = vmatprep.subr.bf16.mxu1 %v3973_v56  ;;  %1995 = vmatprep.subr.bf16.mxu0 %v3976_v57  ;;  %v4054_v55 = vld [vmem:[#allocation7 + $0x68c] ss:$16 sps:$4 sm:$0xff]   ;;  %v4052_v56 = vld [vmem:[#allocation7 + $0x688] ss:$16 sps:$4 sm:$0xff]  }
 0x17b   :  { %v4057_v57 = vld [vmem:[#allocation7 + $0x56c] ss:$16 sps:$4 sm:$0xff]  }
 0x17d   :  { %1971 = vmatpush2.bf16.msra.mxu1 %v3971_v58  ;;  %1996 = vmatpush1.bf16.msra.mxu0 %v3974_v60  ;;  %v4060_v58 = vld [vmem:[#allocation7 + $0x66c] ss:$16 sps:$4 sm:$0xff]   ;;  %v4055_v60 = vld [vmem:[#allocation7 + $0x568] ss:$16 sps:$4 sm:$0xff]  }
 0x17e   :  { %1972 = vmatprep.subr.bf16.mxu1 %v3979_v61  ;;  %1997 = vmatprep.subr.bf16.mxu0 %v3982_v62  ;;  %v4063_v61 = vld [vmem:[#allocation7 + $0x54c] ss:$16 sps:$4 sm:$0xff]  }
 0x17f   :  { %v4066_v62 = vld [vmem:[#allocation7 + $0x64c] ss:$16 sps:$4 sm:$0xff]  }
 0x181   :  { %1973 = vmatpush2.bf16.msra.mxu1 %v3977_v63  ;;  %1998 = vmatpush1.bf16.msra.mxu0 %v3980_v1  ;;  %v4061_v63 = vld [vmem:[#allocation7 + $0x548] ss:$16 sps:$4 sm:$0xff]  }
 0x182   :  { %1999 = vmatprep.subr.bf16.mxu0 %v3985_v2  ;;  %2024 = vmatprep.subr.bf16.mxu1 %v3988_v50  ;;  %v4064_v1 = vld [vmem:[#allocation7 + $0x648] ss:$16 sps:$4 sm:$0xff]   ;;  %v4069_v2 = vld [vmem:[#allocation7 + $0x52c] ss:$16 sps:$4 sm:$0xff]  }
 0x183   :  { %v4072_v50 = vld [vmem:[#allocation7 + $0x62c] ss:$16 sps:$4 sm:$0xff]  }
 0x184   :  { %1975 = vmatmul.mubr.bf16.vlgmr.msra.gmra.mxu1 %v4489_v47  ;;  %v4001_v47 = vld [vmem:[#allocation7 + $0x388] ss:$16 sps:$4 sm:$0xff]  }
 0x185   :  { %2000 = vmatpush2.bf16.msra.mxu0 %v3983_v3  ;;  %2025 = vmatpush1.bf16.msra.mxu1 %v3986_v4  ;;  %v4067_v3 = vld [vmem:[#allocation7 + $0x528] ss:$16 sps:$4 sm:$0xff]  }
 0x186   :  { %2056 = vmatprep.mubr.bf16.mxu1 %v4505_v14  ;;  %2001 = vmatprep.subr.bf16.mxu0 %v3991_v5  ;;  %v4012_v14 = vld [vmem:[#allocation7 + $0x46c] ss:$16 sps:$4 sm:$0xff]   ;;  %v4070_v4 = vld [vmem:[#allocation7 + $0x628] ss:$16 sps:$4 sm:$0xff]  }
 0x187   :  { %2026 = vmatprep.subr.bf16.mxu1 %v3994_v6  ;;  %v4075_v5 = vld [vmem:[#allocation7 + $0x50c] ss:$16 sps:$4 sm:$0xff]  }
 0x188   :  { %v4078_v6 = vld [vmem:[#allocation7 + $0x60c] ss:$16 sps:$4 sm:$0xff]  }
 0x189   :  { %2002 = vmatpush2.bf16.msra.mxu0 %v3989_v7  ;;  %2027 = vmatpush1.bf16.msra.mxu1 %v3992_v8  ;;  %v4073_v7 = vld [vmem:[#allocation7 + $0x508] ss:$16 sps:$4 sm:$0xff]  }
 0x18a   :  { %2003 = vmatprep.subr.bf16.mxu0 %v3997_v9  ;;  %2028 = vmatprep.subr.bf16.mxu1 %v4000_v10  ;;  %v4076_v8 = vld [vmem:[#allocation7 + $0x608] ss:$16 sps:$4 sm:$0xff]  }
 0x18b   :  { %v4081_v9 = vld [vmem:[#allocation8 + $0xac] ss:$12 sps:$4 sm:$0xff]   ;;  %v4079_v10 = vld [vmem:[#allocation8 + $0xa8] ss:$12 sps:$4 sm:$0xff]  }
 0x18d   :  { %2004 = vmatpush2.bf16.msra.mxu0 %v3995_v11  ;;  %2029 = vmatpush1.bf16.msra.mxu1 %v3998_v13  ;;  %v4084_v11 = vld [vmem:[#allocation8 + $0x94] ss:$12 sps:$4 sm:$0xff]   ;;  %v4082_v13 = vld [vmem:[#allocation8 + $0x90] ss:$12 sps:$4 sm:$0xff]  }
 0x18e   :  { %2005 = vmatprep.subr.bf16.mxu0 %v4003_v15  ;;  %2030 = vmatprep.subr.bf16.mxu1 %v4006_v16  ;;  %v4087_v15 = vld [vmem:[#allocation8 + $0x7c] ss:$12 sps:$4 sm:$0xff]   ;;  %v4085_v16 = vld [vmem:[#allocation8 + $0x78] ss:$12 sps:$4 sm:$0xff]  }
 0x191   :  { %2006 = vmatpush2.bf16.msra.mxu0 %v4001_v47  ;;  %2031 = vmatpush1.bf16.msra.mxu1 %v4004_v17  ;;  %v4090_v47 = vld [vmem:[#allocation8 + $0x64] ss:$12 sps:$4 sm:$0xff]   ;;  %v4088_v17 = vld [vmem:[#allocation8 + $0x60] ss:$12 sps:$4 sm:$0xff]  }
 0x192   :  { %2007 = vmatprep.subr.bf16.mxu0 %v4009_v18  ;;  %2032 = vmatprep.subr.bf16.mxu1 %v4012_v14  ;;  %v4143_v18 = vld [vmem:[#allocation8 + $0x228] ss:$12 sps:$4 sm:$0xff]   ;;  %v4145_v14 = vld [vmem:[#allocation8 + $0x22c] ss:$12 sps:$4 sm:$0xff]  }
 0x195   :  { %2008 = vmatpush2.bf16.msra.mxu0 %v4007_v19  ;;  %2033 = vmatpush1.bf16.msra.mxu1 %v4010_v20  ;;  %v4093_v19 = vld [vmem:[#allocation8 + $0x4c] ss:$12 sps:$4 sm:$0xff]   ;;  %v4146_v20 = vld [vmem:[#allocation8 + $0x210] ss:$12 sps:$4 sm:$0xff]  }
 0x196   :  { %2009 = vmatprep.subr.bf16.mxu0 %v4015_v23  ;;  %2034 = vmatprep.subr.bf16.mxu1 %v4018_v21  ;;  %v4151_v23 = vld [vmem:[#allocation8 + $0x1fc] ss:$12 sps:$4 sm:$0xff]   ;;  %v4096_v21 = vld [vmem:[#allocation8 + $0x34] ss:$12 sps:$4 sm:$0xff]  }
 0x199   :  { %2010 = vmatpush2.bf16.msra.mxu0 %v4013_v28  ;;  %2035 = vmatpush1.bf16.msra.mxu1 %v4016_v29  ;;  %v4149_v28 = vld [vmem:[#allocation8 + $0x1f8] ss:$12 sps:$4 sm:$0xff]   ;;  %v4094_v29 = vld [vmem:[#allocation8 + $0x30] ss:$12 sps:$4 sm:$0xff]  }
 0x19a   :  { %2011 = vmatprep.subr.bf16.mxu0 %v4021_v59  ;;  %2036 = vmatprep.subr.bf16.mxu1 %v4024_v31  ;;  %v4154_v59 = vld [vmem:[#allocation8 + $0x1e4] ss:$12 sps:$4 sm:$0xff]   ;;  %v4099_v31 = vld [vmem:[#allocation8 + $0x1c] ss:$12 sps:$4 sm:$0xff]  }
 0x19d   :  { %2012 = vmatpush2.bf16.msra.mxu0 %v4019_v32  ;;  %2037 = vmatpush1.bf16.msra.mxu1 %v4022_v33  ;;  %v4152_v32 = vld [vmem:[#allocation8 + $0x1e0] ss:$12 sps:$4 sm:$0xff]   ;;  %v4097_v33 = vld [vmem:[#allocation8 + $0x18] ss:$12 sps:$4 sm:$0xff]  }
 0x19e   :  { %2013 = vmatprep.subr.bf16.mxu0 %v4027_v34  ;;  %2038 = vmatprep.subr.bf16.mxu1 %v4030_v35  ;;  %v4157_v34 = vld [vmem:[#allocation8 + $0x1cc] ss:$12 sps:$4 sm:$0xff]   ;;  %v4102_v35 = vld [vmem:[#allocation8 + $0x4] ss:$12 sps:$4 sm:$0xff]  }
 0x1a1   :  { %2014 = vmatpush2.bf16.msra.mxu0 %v4025_v36  ;;  %2039 = vmatpush1.bf16.msra.mxu1 %v4028_v37  ;;  %v4155_v36 = vld [vmem:[#allocation8 + $0x1c8] ss:$12 sps:$4 sm:$0xff]   ;;  %v4100_v37 = vld [vmem:[#allocation8] ss:$12 sps:$4 sm:$0xff]  }
 0x1a2   :  { %2040 = vmatprep.subr.bf16.mxu1 %v4033_v38  ;;  %2065 = vmatprep.subr.bf16.mxu0 %v4036_v39  ;;  %v4160_v38 = vld [vmem:[#allocation8 + $0x1b4] ss:$12 sps:$4 sm:$0xff]   ;;  %v4105_v39 = vld [vmem:[#allocation8 + $0x16c] ss:$12 sps:$4 sm:$0xff]  }
 0x1a4   :  { %2016 = vmatmul.mubr.bf16.vlgmr.msra.gmra.mxu0 %v4495_v54  ;;  %v4049_v54 = vld [vmem:[#allocation7 + $0x588] ss:$16 sps:$4 sm:$0xff]  }
 0x1a5   :  { %2041 = vmatpush2.bf16.msra.mxu1 %v4031_v40  ;;  %2066 = vmatpush1.bf16.msra.mxu0 %v4034_v41  ;;  %v4158_v40 = vld [vmem:[#allocation8 + $0x1b0] ss:$12 sps:$4 sm:$0xff]   ;;  %v4103_v41 = vld [vmem:[#allocation8 + $0x168] ss:$12 sps:$4 sm:$0xff]  }
 0x1a6   :  { %2042 = vmatprep.subr.bf16.mxu1 %v4039_v42  ;;  %2067 = vmatprep.subr.bf16.mxu0 %v4042_v43  ;;  %v4108_v42 = vld [vmem:[#allocation8 + $0x154] ss:$12 sps:$4 sm:$0xff]  }
 0x1a7   :  { %2097 = vmatprep.mubr.bf16.mxu0 %v4397_v0  ;;  %v4058_v0 = vld [vmem:[#allocation7 + $0x668] ss:$16 sps:$4 sm:$0xff]  }
 0x1a9   :  { %2043 = vmatpush2.bf16.msra.mxu1 %v4037_v44  ;;  %2068 = vmatpush1.bf16.msra.mxu0 %v4040_v51  ;;  %v4106_v51 = vld [vmem:[#allocation8 + $0x150] ss:$12 sps:$4 sm:$0xff]  }
 0x1aa   :  { %2044 = vmatprep.subr.bf16.mxu1 %v4045_v46  ;;  %2069 = vmatprep.subr.bf16.mxu0 %v4048_v48 }
 0x1ad   :  { %2045 = vmatpush2.bf16.msra.mxu1 %v4043_v49  ;;  %2070 = vmatpush1.bf16.msra.mxu0 %v4046_v52  ;;  %v4111_v49 = vld [vmem:[#allocation8 + $0x13c] ss:$12 sps:$4 sm:$0xff]  }
 0x1ae   :  { %2046 = vmatprep.subr.bf16.mxu1 %v4051_v53  ;;  %2071 = vmatprep.subr.bf16.mxu0 %v4054_v55  ;;  %v4163_v52 = vld [vmem:[#allocation8 + $0x19c] ss:$12 sps:$4 sm:$0xff]   ;;  %v4161_v53 = vld [vmem:[#allocation8 + $0x198] ss:$12 sps:$4 sm:$0xff]  }
 0x1b1   :  { %2047 = vmatpush2.bf16.msra.mxu1 %v4049_v54  ;;  %2072 = vmatpush1.bf16.msra.mxu0 %v4052_v56  ;;  %v4109_v56 = vld [vmem:[#allocation8 + $0x138] ss:$12 sps:$4 sm:$0xff]  }
 0x1b2   :  { %2048 = vmatprep.subr.bf16.mxu1 %v4057_v57  ;;  %2073 = vmatprep.subr.bf16.mxu0 %v4060_v58 }
 0x1b5   :  { %2049 = vmatpush2.bf16.msra.mxu1 %v4055_v60  ;;  %2074 = vmatpush1.bf16.msra.mxu0 %v4058_v0  ;;  %v4114_v60 = vld [vmem:[#allocation8 + $0x124] ss:$12 sps:$4 sm:$0xff]   ;;  %v4164_v0 = vld [vmem:[#allocation8 + $0x180] ss:$12 sps:$4 sm:$0xff]  }
 0x1b6   :  { %2050 = vmatprep.subr.bf16.mxu1 %v4063_v61  ;;  %2075 = vmatprep.subr.bf16.mxu0 %v4066_v62  ;;  %v4166_v61 = vld [vmem:[#allocation8 + $0x184] ss:$12 sps:$4 sm:$0xff]   ;;  %v4169_v62 = vld [vmem:[#allocation8 + $0x2ec] ss:$12 sps:$4 sm:$0xff]  }
 0x1b9   :  { %2051 = vmatpush2.bf16.msra.mxu1 %v4061_v63  ;;  %2076 = vmatpush1.bf16.msra.mxu0 %v4064_v1  ;;  %v4112_v63 = vld [vmem:[#allocation8 + $0x120] ss:$12 sps:$4 sm:$0xff]   ;;  %v4167_v1 = vld [vmem:[#allocation8 + $0x2e8] ss:$12 sps:$4 sm:$0xff]  }
 0x1ba   :  { %2052 = vmatprep.subr.bf16.mxu1 %v4069_v2  ;;  %2077 = vmatprep.subr.bf16.mxu0 %v4072_v50  ;;  %v4117_v2 = vld [vmem:[#allocation8 + $0x10c] ss:$12 sps:$4 sm:$0xff]   ;;  %v4172_v50 = vld [vmem:[#allocation8 + $0x2d4] ss:$12 sps:$4 sm:$0xff]  }
 0x1bd   :  { %2053 = vmatpush2.bf16.msra.mxu1 %v4067_v3  ;;  %2078 = vmatpush1.bf16.msra.mxu0 %v4070_v4  ;;  %v4115_v3 = vld [vmem:[#allocation8 + $0x108] ss:$12 sps:$4 sm:$0xff]   ;;  %v4170_v4 = vld [vmem:[#allocation8 + $0x2d0] ss:$12 sps:$4 sm:$0xff]  }
 0x1be   :  { %2054 = vmatprep.subr.bf16.mxu1 %v4075_v5  ;;  %2079 = vmatprep.subr.bf16.mxu0 %v4078_v6  ;;  %v4120_v5 = vld [vmem:[#allocation8 + $0xf4] ss:$12 sps:$4 sm:$0xff]   ;;  %v4175_v6 = vld [vmem:[#allocation8 + $0x2bc] ss:$12 sps:$4 sm:$0xff]  }
 0x1c1   :  { %2055 = vmatpush2.bf16.msra.mxu1 %v4073_v7  ;;  %2080 = vmatpush1.bf16.msra.mxu0 %v4076_v8  ;;  %v4118_v7 = vld [vmem:[#allocation8 + $0xf0] ss:$12 sps:$4 sm:$0xff]   ;;  %v4173_v8 = vld [vmem:[#allocation8 + $0x2b8] ss:$12 sps:$4 sm:$0xff]  }
 0x1c2   :  { %2770 = vmatprep.subr.bf16.mxu0 %v4081_v9  ;;  %2811 = vmatprep.subr.bf16.mxu1 %v4145_v14  ;;  %v4123_v9 = vld [vmem:[#allocation8 + $0xdc] ss:$12 sps:$4 sm:$0xff]   ;;  %v4184_v14 = vld [vmem:[#allocation8 + $0x274] ss:$12 sps:$4 sm:$0xff]  }
 0x1c4   :  { %2057 = vmatmul.mubr.bf16.vlgmr.msra.gmra.mxu1 %v4517_v30  ;;  %2098 = vmatmul.mubr.bf16.vlgmr.msra.gmra.mxu0 %v4510_v45  ;;  %v4148_v30 = vld [vmem:[#allocation8 + $0x214] ss:$12 sps:$4 sm:$0xff]  }
 0x1c5   :  { %2771 = vmatpush1.bf16.msra.mxu0 %v4079_v10  ;;  %2812 = vmatpush1.bf16.msra.mxu1 %v4143_v18  ;;  %v4091_v45 = vld [vmem:[#allocation8 + $0x48] ss:$12 sps:$4 sm:$0xff]   ;;  %v4178_v10 = vld [vmem:[#allocation8 + $0x2a4] ss:$12 sps:$4 sm:$0xff]  }
 0x1c6   :  { %2772 = vmatprep.subr.bf16.mxu0 %v4084_v11  ;;  %2813 = vmatprep.subr.bf16.mxu1 %v4148_v30  ;;  %v4121_v11 = vld [vmem:[#allocation8 + $0xd8] ss:$12 sps:$4 sm:$0xff]   ;;  %v4127_v18 = vld [vmem:[#allocation8 + $0x170] ss:$12 sps:$4 sm:$0xff]  }
 0x1c9   :  { %2773 = vmatpush1.bf16.msra.mxu0 %v4082_v13  ;;  %2814 = vmatpush1.bf16.msra.mxu1 %v4146_v20  ;;  %v4176_v13 = vld [vmem:[#allocation8 + $0x2a0] ss:$12 sps:$4 sm:$0xff]  }
 0x1ca   :  { %2774 = vmatprep.subr.bf16.mxu0 %v4087_v15  ;;  %2815 = vmatprep.subr.bf16.mxu1 %v4151_v23  ;;  %v4126_v15 = vld [vmem:[#allocation8 + $0xc4] ss:$12 sps:$4 sm:$0xff]  }
 0x1cb   :  { %v4185_v23 = vld [vmem:[#allocation8 + $0x258] ss:$12 sps:$4 sm:$0xff]  }
 0x1cd   :  { %2775 = vmatpush1.bf16.msra.mxu0 %v4085_v16  ;;  %2816 = vmatpush1.bf16.msra.mxu1 %v4149_v28  ;;  %v4181_v16 = vld [vmem:[#allocation8 + $0x28c] ss:$12 sps:$4 sm:$0xff]  }
 0x1ce   :  { %2776 = vmatprep.subr.bf16.mxu0 %v4090_v47  ;;  %2817 = vmatprep.subr.bf16.mxu1 %v4154_v59  ;;  %v4124_v47 = vld [vmem:[#allocation8 + $0xc0] ss:$12 sps:$4 sm:$0xff]  }
 0x1cf   :  { %v4188_v59 = vld [vmem:[#allocation8 + $0x240] ss:$12 sps:$4 sm:$0xff]  }
 0x1d1   :  { %2777 = vmatpush1.bf16.msra.mxu0 %v4088_v17  ;;  %2818 = vmatpush1.bf16.msra.mxu1 %v4152_v32  ;;  %v4179_v17 = vld [vmem:[#allocation8 + $0x288] ss:$12 sps:$4 sm:$0xff]  }
 0x1d2   :  { %2778 = vmatprep.subr.bf16.mxu0 %v4093_v19  ;;  %2819 = vmatprep.subr.bf16.mxu1 %v4157_v34  ;;  %v4182_v19 = vld [vmem:[#allocation8 + $0x270] ss:$12 sps:$4 sm:$0xff]   ;;  %v4535_v32 = vld [vmem:[#allocation11 + $0x7] sm:$0xf] }
 0x1d3   :  { %v645_v34 = vrot.slane %v4535_v32, %v4476_v26 }
 0x1d5   :  { %2779 = vmatpush1.bf16.msra.mxu0 %v4091_v45  ;;  %2820 = vmatpush1.bf16.msra.mxu1 %v4155_v36  ;;  %v4187_v45 = vld [vmem:[#allocation8 + $0x25c] ss:$12 sps:$4 sm:$0xff]  }
 0x1d6   :  { %2780 = vmatprep.subr.bf16.mxu0 %v4096_v21  ;;  %2821 = vmatprep.subr.bf16.mxu1 %v4160_v38 }
 0x1d9   :  { %2781 = vmatpush1.bf16.msra.mxu0 %v4094_v29  ;;  %2822 = vmatpush1.bf16.msra.mxu1 %v4158_v40  ;;  %v4190_v29 = vld [vmem:[#allocation8 + $0x244] ss:$12 sps:$4 sm:$0xff]  }
 0x1da   :  { %2782 = vmatprep.subr.bf16.mxu0 %v4099_v31  ;;  %2823 = vmatprep.subr.bf16.mxu1 %v4163_v52  ;;  %v4191_v31 = vld [vmem:[#allocation8 + $0x2f0] ss:$12 sps:$4 sm:$0xff]  }
 0x1dd   :  { %2783 = vmatpush1.bf16.msra.mxu0 %v4097_v33  ;;  %2824 = vmatpush1.bf16.msra.mxu1 %v4161_v53  ;;  %v641_v33 = vrot.slane %v4535_v32, %v4470_v24 }
 0x1de   :  { %2784 = vmatprep.subr.bf16.mxu0 %v4102_v35  ;;  %2825 = vmatprep.subr.bf16.mxu1 %v4166_v61  ;;  %v4135_v61 = vld [vmem:[#allocation8 + $0x110] ss:$12 sps:$4 sm:$0xff]  }
 0x1e1   :  { %2785 = vmatpush1.bf16.msra.mxu0 %v4100_v37  ;;  %2826 = vmatpush1.bf16.msra.mxu1 %v4164_v0  ;;  %v4134_v0 = vld [vmem:[#allocation8 + $0x68] ss:$12 sps:$4 sm:$0xff]  }
 0x1e2   :  { %2786 = vmatprep.subr.bf16.mxu0 %v4105_v39  ;;  %2827 = vmatprep.subr.bf16.mxu1 %v4169_v62  ;;  %v4136_v62 = vld [vmem:[#allocation8 + $0x50] ss:$12 sps:$4 sm:$0xff]  }
 0x1e4   :  { %v4527_v43 = vpop.f32.mrf.mxu0  ;;  %v4529_v44 = vpop.f32.mrf.mxu1 }
 0x1e5   :  { %2787 = vmatpush2.bf16.msra.mxu0 %v4103_v41  ;;  %2828 = vmatpush2.bf16.msra.mxu1 %v4167_v1  ;;  %v1813_v35 = vadd.f32 %v4527_v43, %v641_v33  ;;  %v4129_v43 = vld [vmem:[#allocation8 + $0x158] ss:$12 sps:$4 sm:$0xff]  }
 0x1e6   :  { %v4531_v46 = vpop.f32.mrf.mxu0  ;;  %v4533_v48 = vpop.f32.mrf.mxu1  ;;  %2788 = vmatprep.subr.bf16.mxu0 %v4108_v42  ;;  %2829 = vmatprep.subr.bf16.mxu1 %v4172_v50  ;;  %v4138_v1 = vld [vmem:[#allocation8 + $0x38] ss:$12 sps:$4 sm:$0xff]  }
 0x1e7   :  { %v1815_v36 = vadd.f32 %v4531_v46, %v645_v34  ;;  %v1854_v37 = vadd.f32 %v4529_v44, %v1813_v35  ;;  %v4130_v44 = vld [vmem:[#allocation8 + $0x98] ss:$12 sps:$4 sm:$0xff]   ;;  %v4131_v46 = vld [vmem:[#allocation8 + $0x140] ss:$12 sps:$4 sm:$0xff]  }
 0x1e8   :  { %v1816_v55 = vpop.f32.mrf.mxu0  ;;  %v1857_v54 = vpop.f32.mrf.mxu1 }
 0x1e9   :  { %2789 = vmatpush2.bf16.msra.mxu0 %v4106_v51  ;;  %2830 = vmatpush2.bf16.msra.mxu1 %v4170_v4  ;;  %v1856_v39 = vadd.f32 %v4533_v48, %v1815_v36  ;;  %v4132_v48 = vld [vmem:[#allocation8 + $0x80] ss:$12 sps:$4 sm:$0xff]  }
 0x1ea   :  { %v1817_v57 = vpop.f32.mrf.mxu0  ;;  %v1858_v58 = vpop.f32.mrf.mxu1  ;;  %2790 = vmatprep.subr.bf16.mxu0 %v4111_v49  ;;  %2831 = vmatprep.subr.bf16.mxu1 %v4175_v6 }
 0x1eb   :  { %v4128_v57 = vld [vmem:[#allocation8 + $0xb0] ss:$12 sps:$4 sm:$0xff]  }
 0x1ed   :  { %2791 = vmatpush2.bf16.msra.mxu0 %v4109_v56  ;;  %2832 = vmatpush2.bf16.msra.mxu1 %v4173_v8 }
 0x1ee   :  { %2792 = vmatprep.subr.bf16.mxu0 %v4114_v60  ;;  %2833 = vmatprep.subr.bf16.mxu1 %v4178_v10  ;;  %v4133_v60 = vld [vmem:[#allocation8 + $0x128] ss:$12 sps:$4 sm:$0xff]  }
 0x1f1   :  { %2793 = vmatpush2.bf16.msra.mxu0 %v4112_v63  ;;  %2834 = vmatpush2.bf16.msra.mxu1 %v4176_v13  ;;  %v4137_v63 = vld [vmem:[#allocation8 + $0xf8] ss:$12 sps:$4 sm:$0xff]  }
 0x1f2   :  { %2794 = vmatprep.subr.bf16.mxu0 %v4117_v2  ;;  %2835 = vmatprep.subr.bf16.mxu1 %v4181_v16  ;;  %v4139_v2 = vld [vmem:[#allocation8 + $0xe0] ss:$12 sps:$4 sm:$0xff]   ;;  %v653_v16 = vrot.slane %v4535_v32, %v139_v27  ;;  %v4192_v27 = vld [vmem:[#allocation8 + $0x230] ss:$12 sps:$4 sm:$0xff]  }
 0x1f5   :  { %2795 = vmatpush2.bf16.msra.mxu0 %v4115_v3  ;;  %2836 = vmatpush2.bf16.msra.mxu1 %v4179_v17  ;;  %v4140_v3 = vld [vmem:[#allocation8 + $0x20] ss:$12 sps:$4 sm:$0xff]  }
 0x1f6   :  { %2796 = vmatprep.subr.bf16.mxu0 %v4120_v5  ;;  %2837 = vmatprep.subr.bf16.mxu1 %v4184_v14  ;;  %v4141_v5 = vld [vmem:[#allocation8 + $0xc8] ss:$12 sps:$4 sm:$0xff]  }
 0x1f9   :  { %2797 = vmatpush2.bf16.msra.mxu0 %v4118_v7  ;;  %2838 = vmatpush2.bf16.msra.mxu1 %v4182_v19  ;;  %v4142_v7 = vld [vmem:[#allocation8 + $0x8] ss:$12 sps:$4 sm:$0xff]  }
 0x1fa   :  { %2798 = vmatprep.subr.bf16.mxu0 %v4123_v9  ;;  %2839 = vmatprep.subr.bf16.mxu1 %v4187_v45 }
 0x1fd   :  { %2799 = vmatpush2.bf16.msra.mxu0 %v4121_v11  ;;  %2840 = vmatpush2.bf16.msra.mxu1 %v4185_v23 }
 0x1fe   :  { %2800 = vmatprep.subr.bf16.mxu0 %v4126_v15  ;;  %2841 = vmatprep.subr.bf16.mxu1 %v4190_v29  ;;  %v649_v15 = vrot.slane %v4535_v32, %v4473_v25 }
 0x201   :  { %2801 = vmatpush2.bf16.msra.mxu0 %v4124_v47  ;;  %2842 = vmatpush2.bf16.msra.mxu1 %v4188_v59 }
 0x202   :  { %3602 = vmatprep.subr.bf16.mxu0 %v4127_v18  ;;  %3624 = vmatprep.subr.bf16.mxu1 %v4191_v31 }
 0x204   :  { %v1935_v20 = vpop.f32.mrf.mxu1 }
 0x206   :  { %v1937_v30 = vpop.f32.mrf.mxu1 }
 0x208   :  { %v1939_v21 = vpop.f32.mrf.mxu1 }
 0x20a   :  { %v1940_v28 = vpop.f32.mrf.mxu1 }
 0x224   :  { %v1894_v38 = vpop.f32.mrf.mxu0 }
 0x225   :  { %v1895_v40 = vadd.f32 %v1894_v38, %v1854_v37  ;;  %v4193_v37 = vld [vmem:[#allocation8 + $0x2d8] ss:$12 sps:$4 sm:$0xff]  }
 0x226   :  { %v1896_v41 = vpop.f32.mrf.mxu0  ;;  %v4194_v38 = vld [vmem:[#allocation8 + $0x218] ss:$12 sps:$4 sm:$0xff]  }
 0x227   :  { %v1936_v42 = vadd.f32 %v1935_v20, %v1895_v40  ;;  %v1897_v51 = vadd.f32 %v1896_v41, %v1856_v39  ;;  %v4195_v39 = vld [vmem:[#allocation8 + $0x2c0] ss:$12 sps:$4 sm:$0xff]   ;;  %v4197_v41 = vld [vmem:[#allocation8 + $0x2a8] ss:$12 sps:$4 sm:$0xff]  }
 0x228   :  { %v1898_v49 = vpop.f32.mrf.mxu0  ;;  %v4196_v40 = vld [vmem:[#allocation8 + $0x200] ss:$12 sps:$4 sm:$0xff]  }
 0x229   :  { %v1938_v52 = vadd.f32 %v1937_v30, %v1897_v51  ;;  %v2106_v53 = vmax.f32 %v1936_v42, 0.0  ;;  %v4207_v42 = vld [vmem:[#allocation10 + $0x78] sm:$0xff]   ;;  %v4209_v49 = vld [vmem:[#allocation10 + $0x70] sm:$0xff]  }
 0x22a   :  { %v1899_v55 = vpop.f32.mrf.mxu0  ;;  %v4208_v51 = vld [vmem:[#allocation10 + $0x38] sm:$0xff]  }
 0x22b   :  { %v2107_v54 = vmax.f32 %v1938_v52, 0.0  ;;  %v2110_v58 = vpack.c.bf16 %v2106_v53, %v2106_v53  ;;  %v4198_v52 = vld [vmem:[#allocation8 + $0x1e8] ss:$12 sps:$4 sm:$0xff]   ;;  %v4199_v55 = vld [vmem:[#allocation8 + $0x290] ss:$12 sps:$4 sm:$0xff]  }
 0x22c   :  { %v4210_v53 = vld [vmem:[#allocation10 + $0x30] sm:$0xff]  }
 0x22d   :  { %v2111_v56 = vpack.c.bf16 %v2107_v54, %v2107_v54  ;;  %v4211_v54 = vld [vmem:[#allocation10 + $0x68] sm:$0xff]  }
 0x22f   :  { %2802 = vmatprep.mubr.bf16.mxu0 %v2111_v56 }
 0x230   :  { %2803 = vmatmul.mubr.bf16.vlgmr.msra.gmra.mxu0 %v2110_v58 }
 0x231   :  { %3603 = vmatpush3.bf16.msra.mxu0 %v4128_v57  ;;  %2884 = vmatprep.mubr.bf16.mxu0 %v2111_v56  ;;  %v4200_v56 = vld [vmem:[#allocation8 + $0x1d0] ss:$12 sps:$4 sm:$0xff]   ;;  %v4212_v57 = vld [vmem:[#allocation10 + $0x28] sm:$0xff]  }
 0x232   :  { %3604 = vmatprep.subr.bf16.mxu0 %v4129_v43  ;;  %v4213_v43 = vld [vmem:[#allocation10 + $0x60] sm:$0xff]  }
 0x235   :  { %3605 = vmatpush3.bf16.msra.mxu0 %v4130_v44  ;;  %v4202_v44 = vld [vmem:[#allocation8 + $0x1b8] ss:$12 sps:$4 sm:$0xff]  }
 0x236   :  { %3606 = vmatprep.subr.bf16.mxu0 %v4131_v46  ;;  %v4214_v46 = vld [vmem:[#allocation10 + $0x20] sm:$0xff]  }
 0x239   :  { %3607 = vmatpush3.bf16.msra.mxu0 %v4132_v48  ;;  %v4203_v48 = vld [vmem:[#allocation8 + $0x260] ss:$12 sps:$4 sm:$0xff]  }
 0x23a   :  { %3608 = vmatprep.subr.bf16.mxu0 %v4133_v60  ;;  %v4215_v60 = vld [vmem:[#allocation10 + $0x58] sm:$0xff]  }
 0x23d   :  { %3609 = vmatpush3.bf16.msra.mxu0 %v4134_v0  ;;  %v4204_v0 = vld [vmem:[#allocation8 + $0x1a0] ss:$12 sps:$4 sm:$0xff]  }
 0x23e   :  { %3610 = vmatprep.subr.bf16.mxu0 %v4135_v61  ;;  %v4216_v61 = vld [vmem:[#allocation10 + $0x18] sm:$0xff]  }
 0x241   :  { %3611 = vmatpush3.bf16.msra.mxu0 %v4136_v62  ;;  %v4205_v62 = vld [vmem:[#allocation8 + $0x248] ss:$12 sps:$4 sm:$0xff]  }
 0x242   :  { %3612 = vmatprep.subr.bf16.mxu0 %v4137_v63  ;;  %v4217_v63 = vld [vmem:[#allocation10 + $0x50] sm:$0xff]  }
 0x244   :  { %v1976_v50 = vpop.f32.mrf.mxu1 }
 0x245   :  { %3613 = vmatpush3.bf16.msra.mxu0 %v4138_v1  ;;  %v1977_v47 = vadd.f32 %v1976_v50, %v649_v15  ;;  %v4206_v1 = vld [vmem:[#allocation8 + $0x188] ss:$12 sps:$4 sm:$0xff]  }
 0x246   :  { %v1978_v4 = vpop.f32.mrf.mxu1  ;;  %3614 = vmatprep.subr.bf16.mxu0 %v4139_v2  ;;  %v4218_v2 = vld [vmem:[#allocation10 + $0x10] sm:$0xff]   ;;  %v4219_v50 = vld [vmem:[#allocation10 + $0x48] sm:$0xff]  }
 0x247   :  { %v1979_v17 = vadd.f32 %v1978_v4, %v653_v16  ;;  %v4221_v4 = vld [vmem:[#allocation10 + $0x40] sm:$0xff]   ;;  %v4229_v16 = vld [vmem:[#allocation10 + $0x88] sm:$0xff]  }
 0x248   :  { %v1980_v6 = vpop.f32.mrf.mxu1 }
 0x249   :  { %3615 = vmatpush3.bf16.msra.mxu0 %v4140_v3  ;;  %v4220_v3 = vld [vmem:[#allocation10 + $0x8] sm:$0xff]   ;;  %v4223_v6 = vld [vmem:[#allocation10 + $0xb8] sm:$0xff]  }
 0x24a   :  { %v1981_v8 = vpop.f32.mrf.mxu1  ;;  %3616 = vmatprep.subr.bf16.mxu0 %v4141_v5  ;;  %v4222_v5 = vld [vmem:[#allocation10] sm:$0xff]  }
 0x24b   :  { %v4225_v8 = vld [vmem:[#allocation10 + $0xa8] sm:$0xff]  }
 0x24d   :  { %3617 = vmatpush3.bf16.msra.mxu0 %v4142_v7  ;;  %v4224_v7 = vld [vmem:[#allocation10 + $0xb0] sm:$0xff]  }
 0x24e   :  { %3646 = vmatprep.subr.bf16.mxu0 %v4207_v42 }
 0x250   :  { %2885 = vmatmul.mubr.bf16.vlgmr.msra.gmra.mxu0 %v2110_v58  ;;  %v4201_v58 = vld [vmem:[#allocation8 + $0x278] ss:$12 sps:$4 sm:$0xff]  }
 0x251   :  { %3647 = vmatpush3.bf16.msra.mxu0 %v4208_v51 }
 0x252   :  { %3648 = vmatprep.subr.bf16.mxu0 %v4209_v49 }
 0x255   :  { %3649 = vmatpush3.bf16.msra.mxu0 %v4210_v53 }
 0x256   :  { %3650 = vmatprep.subr.bf16.mxu0 %v4211_v54 }
 0x259   :  { %3651 = vmatpush3.bf16.msra.mxu0 %v4212_v57 }
 0x25a   :  { %3652 = vmatprep.subr.bf16.mxu0 %v4213_v43 }
 0x25d   :  { %3653 = vmatpush3.bf16.msra.mxu0 %v4214_v46 }
 0x25e   :  { %3654 = vmatprep.subr.bf16.mxu0 %v4215_v60 }
 0x261   :  { %3655 = vmatpush3.bf16.msra.mxu0 %v4216_v61 }
 0x262   :  { %3656 = vmatprep.subr.bf16.mxu0 %v4217_v63 }
 0x264   :  { %v2017_v9 = vpop.f32.mrf.mxu0 }
 0x265   :  { %v2018_v18 = vadd.f32 %v2017_v9, %v1977_v47  ;;  %3657 = vmatpush3.bf16.msra.mxu0 %v4218_v2  ;;  %v4226_v9 = vld [vmem:[#allocation10 + $0xa0] sm:$0xff]  }
 0x266   :  { %v2019_v10 = vpop.f32.mrf.mxu0  ;;  %3658 = vmatprep.subr.bf16.mxu0 %v4219_v50 }
 0x267   :  { %v2020_v20 = vadd.f32 %v2019_v10, %v1979_v17  ;;  %v4227_v10 = vld [vmem:[#allocation10 + $0x98] sm:$0xff]  }
 0x268   :  { %v2021_v11 = vpop.f32.mrf.mxu0 }
 0x269   :  { %3659 = vmatpush3.bf16.msra.mxu0 %v4220_v3  ;;  %v4228_v11 = vld [vmem:[#allocation10 + $0x90] sm:$0xff]  }
 0x26a   :  { %v2022_v13 = vpop.f32.mrf.mxu0  ;;  %3660 = vmatprep.subr.bf16.mxu0 %v4221_v4 }
 0x26d   :  { %3661 = vmatpush3.bf16.msra.mxu0 %v4222_v5 }
 0x284   :  { %v2058_v14 = vpop.f32.mrf.mxu1  ;;  %v2099_v19 = vpop.f32.mrf.mxu0 }
 0x285   :  { %v2059_v30 = vadd.f32 %v2058_v14, %v2018_v18  ;;  %v4230_v18 = vld [vmem:[#allocation10 + $0x80] sm:$0xff]  }
 0x286   :  { %v2060_v45 = vpop.f32.mrf.mxu1  ;;  %v2101_v23 = vpop.f32.mrf.mxu0 }
 0x287   :  { %v2100_v21 = vadd.f32 %v2099_v19, %v2059_v30  ;;  %v2061_v28 = vadd.f32 %v2060_v45, %v2020_v20 }
 0x288   :  { %v2062_v29 = vpop.f32.mrf.mxu1  ;;  %v2103_v59 = vpop.f32.mrf.mxu0 }
 0x289   :  { %v2102_v31 = vadd.f32 %v2101_v23, %v2061_v28  ;;  %v2108_v33 = vmax.f32 %v2100_v21, 0.0  ;;  %v105_v23 = vld [vmem:[#allocation11 + $0xb] sm:$0x7] }
 0x28a   :  { %v2063_v34 = vpop.f32.mrf.mxu1  ;;  %v2104_v35 = vpop.f32.mrf.mxu0  ;;  %v2246_v21 = vrot.slane %v105_v23, %v4470_v24  ;;  %v2250_v28 = vrot.slane %v105_v23, %v4476_v26 }
 0x28b   :  { %v2109_v22 = vmax.f32 %v2102_v31, 0.0  ;;  %v2112_v32 = vpack.c.bf16 %v2108_v33, %v2108_v33 }
 0x28d   :  { %v2113_v36 = vpack.c.bf16 %v2109_v22, %v2109_v22 }
 0x28f   :  { %2843 = vmatprep.mubr.bf16.mxu1 %v2113_v36 }
 0x290   :  { %2844 = vmatmul.mubr.bf16.vlgmr.msra.gmra.mxu1 %v2112_v32 }
 0x291   :  { %3625 = vmatpush3.bf16.msra.mxu1 %v4192_v27  ;;  %2924 = vmatprep.mubr.bf16.mxu1 %v2113_v36 }
 0x292   :  { %3626 = vmatprep.subr.bf16.mxu1 %v4193_v37 }
 0x295   :  { %3627 = vmatpush3.bf16.msra.mxu1 %v4194_v38  ;;  %v2254_v38 = vrot.slane %v105_v23, %v4473_v25 }
 0x296   :  { %3628 = vmatprep.subr.bf16.mxu1 %v4195_v39 }
 0x299   :  { %3629 = vmatpush3.bf16.msra.mxu1 %v4196_v40 }
 0x29a   :  { %3630 = vmatprep.subr.bf16.mxu1 %v4197_v41 }
 0x29d   :  { %3631 = vmatpush3.bf16.msra.mxu1 %v4198_v52 }
 0x29e   :  { %3632 = vmatprep.subr.bf16.mxu1 %v4199_v55 }
 0x2a1   :  { %3633 = vmatpush3.bf16.msra.mxu1 %v4200_v56 }
 0x2a2   :  { %3634 = vmatprep.subr.bf16.mxu1 %v4201_v58  ;;  %v3574_v58 = vld [vmem:[#allocation11 + $0xe] ss:$0 sm:$0xff] }
 0x2a5   :  { %3635 = vmatpush3.bf16.msra.mxu1 %v4202_v44 }
 0x2a6   :  { %3636 = vmatprep.subr.bf16.mxu1 %v4203_v48 }
 0x2a9   :  { %3637 = vmatpush3.bf16.msra.mxu1 %v4204_v0 }
 0x2aa   :  { %3638 = vmatprep.subr.bf16.mxu1 %v4205_v62 }
 0x2ad   :  { %3639 = vmatpush3.bf16.msra.mxu1 %v4206_v1 }
 0x2ae   :  { %3685 = vmatprep.subr.bf16.mxu1 %v4398_v12 }
 0x2b0   :  { %2925 = vmatmul.mubr.bf16.vlgmr.msra.gmra.mxu1 %v2112_v32 }
 0x2b1   :  { %3701 = vmatprep.mubr.msk.bf16.mxu1 %vm4399_vm1, %v4398_v12  ;;  %3686 = vmatpush3.bf16.msra.mxu1 %v4223_v6 }
 0x2b2   :  { %3687 = vmatprep.subr.bf16.mxu1 %v4398_v12 }
 0x2b5   :  { %3688 = vmatpush3.bf16.msra.mxu1 %v4224_v7 }
 0x2b6   :  { %3689 = vmatprep.subr.bf16.mxu1 %v4398_v12 }
 0x2b9   :  { %3690 = vmatpush3.bf16.msra.mxu1 %v4225_v8 }
 0x2ba   :  { %3691 = vmatprep.subr.bf16.mxu1 %v4398_v12 }
 0x2bd   :  { %3692 = vmatpush3.bf16.msra.mxu1 %v4226_v9 }
 0x2be   :  { %3693 = vmatprep.subr.bf16.mxu1 %v4398_v12 }
 0x2c1   :  { %3694 = vmatpush3.bf16.msra.mxu1 %v4227_v10 }
 0x2c2   :  { %3695 = vmatprep.subr.bf16.mxu1 %v4398_v12 }
 0x2c5   :  { %3696 = vmatpush3.bf16.msra.mxu1 %v4228_v11 }
 0x2c6   :  { %3697 = vmatprep.subr.bf16.mxu1 %v4398_v12 }
 0x2c9   :  { %3698 = vmatpush3.bf16.msra.mxu1 %v4229_v16 }
 0x2ca   :  { %3699 = vmatprep.subr.bf16.mxu1 %v4398_v12 }
 0x2cd   :  { %3700 = vmatpush3.bf16.msra.mxu1 %v4230_v18 }
 0x2f0   :  { %v2804_v13 = vpop.f32.mrf.mxu0 }
 0x2f1   :  { %v2805_v29 = vadd.f32 %v2804_v13, %v2246_v21 }
 0x2f2   :  { %v2806_v15 = vpop.f32.mrf.mxu0 }
 0x2f3   :  { %v2807_v31 = vadd.f32 %v2806_v15, %v2250_v28 }
 0x2f4   :  { %v2808_v47 = vpop.f32.mrf.mxu0 }
 0x2f6   :  { %v2809_v17 = vpop.f32.mrf.mxu0 }
 0x310   :  { %v3618_v14 = vpop.f32.mrf.mxu0 }
 0x312   :  { %v3619_v19 = vpop.f32.mrf.mxu0 }
 0x313   :  { %v3620_v20 = vadd.f32 %v3619_v19, %v3618_v14 }
 0x314   :  { %v3621_v30 = vpop.f32.mrf.mxu0 }
 0x315   :  { %v2887_v40 = vadd.f32 %v3620_v20, %v2254_v38 }
 0x316   :  { %v3622_v45 = vpop.f32.mrf.mxu0 }
 0x350   :  { %v2845_v59 = vpop.f32.mrf.mxu1 }
 0x351   :  { %v2846_v33 = vadd.f32 %v2845_v59, %v2805_v29 }
 0x352   :  { %v2847_v34 = vpop.f32.mrf.mxu1 }
 0x353   :  { %v2848_v35 = vadd.f32 %v2847_v34, %v2807_v31  ;;  %v2932_v12 = vmax.f32 %v2846_v33, 0.0 }
 0x354   :  { %v2849_v22 = vpop.f32.mrf.mxu1 }
 0x355   :  { %v2933_v36 = vmax.f32 %v2848_v35, 0.0  ;;  %v2935_v37 = vpack.c.bf16 %v2932_v12, %v2932_v12 }
 0x356   :  { %v2850_v27 = vpop.f32.mrf.mxu1 }
 0x357   :  { %v2936_v32 = vpack.c.bf16 %v2933_v36, %v2933_v36 }
 0x359   :  { %3168 = vmatprep.mubr.bf16.mxu0 %v2936_v32 }
 0x35a   :  { %3169 = vmatmul.mubr.bf16.vlgmr.msra.gmra.mxu0 %v2935_v37 }
 0x370   :  { %v3640_v39 = vpop.f32.mrf.mxu1 }
 0x372   :  { %v3641_v24 = vpop.f32.mrf.mxu1 }
 0x373   :  { %v3642_v26 = vadd.f32 %v3641_v24, %v3640_v39 }
 0x374   :  { %v3643_v41 = vpop.f32.mrf.mxu1 }
 0x375   :  { %v2927_v42 = vadd.f32 %v3642_v26, %v2887_v40 }
 0x376   :  { %v3644_v51 = vpop.f32.mrf.mxu1 }
 0x377   :  { %v2934_v49 = vmax.f32 %v2927_v42, 0.0 }
 0x379   :  { %v2937_v52 = vpack.c.bf16 %v2934_v49, %v2934_v49 }
 0x37b   :  { %3702 = vmatmul.mubr.bf16.vlgmr.msra.gmra.mxu1 %v2937_v52 }
 0x41a   :  { %v3662_v53 = vpop.f32.mrf.mxu0 }
 0x41c   :  { %v3663_v55 = vpop.f32.mrf.mxu0 }
 0x41d   :  { %v3664_v57 = vadd.f32 %v3663_v55, %v3662_v53 }
 0x41e   :  { %v3665_v54 = vpop.f32.mrf.mxu0 }
 0x41f   :  { %v3171_v43 = vadd.f32 %v3664_v57, %v3574_v58 }
 0x420   :  { %v3666_v56 = vpop.f32.mrf.mxu0 }
 0x43b   :  { %v3210_v44 = vpop.f32.mrf.mxu1 }
 0x43c   :  { %v3211_v46 = vadd.f32 %v3210_v44, %v3171_v43 }
 0x43d   :  { %v3703_v25 = vpop.f32.mrf.mxu1 }
 0x43e   :  { %4231 = vtanh.f32 %v3211_v46 }
 0x43f   :  { %v3213_v48 = vpop.f32.mrf.mxu1 }
 0x441   :  { %v3704_v60 = vpop.f32.mrf.mxu1 }
 0x44b   :  { %v4232_v0 = vpop.eup %4231 }
 0x44c   :  { %3217 = vst [vmem:[#allocation13] sm:$0xff] %v4232_v0 }
 0x44d   :  { %4364 = shalt.err (!%p4361_p6)
}
 0x44e   :  { %3227 = dma.vmem_to_hbm [thread:$0]  %s3225_s5, 128, %s4572_s6, [#allocation4]  }
 0x44f   :  { %4381 = dma.done.wait [#allocation4], 128  }
 0x450   :  { %4382 = vsyncadd [#allocation4], 4294967168 }
 0x451   :  { %3231 = vsyncpa [#allocation3], 1 }
 0x452   :  { %3232 = vsyncpa [#allocation6], 1 }
 0x453   :  { %3233 = vsyncpa [#allocation9], 1 }
 0x454   :  { %3234 = vsyncpa [#allocation12], 1 }
 0x455   :  { %3235 = vsyncpa [#allocation4], 1 }

</bundles_post_ra>
